<compile_context>
chip_gen: v7x
topology: tpu7x:2x2x1
jax: 0.10.0
libtpu: 0.0.40
codegen_flags: <defaults>
</compile_context>

<pallas_src>
import functools

import jax
import jax.numpy as jnp
import numpy as np
from jax.experimental import pallas as pl
from jax.experimental.pallas import tpu as pltpu

# ---------------- small config consistent with the module ----------------
BATCH = 2
SEQ = 8
HIDDEN = 32                     # config.hidden_size (route1 in-features tied to this)
INTERMEDIATE = 64               # config.intermediate_size
NUM_EXPERTS = 4                 # hard-coded in the module
TOP_K = NUM_EXPERTS // 2        # k = 2
EXPERT_I = INTERMEDIATE // NUM_EXPERTS   # 16


# =========================== in-kernel helpers ===========================
def _silu(x):
    return x * jax.nn.sigmoid(x)


def _topk_mask_cols(cols, k):
    """cols: list of E (T,1) f32 columns. Hard top-k mask per token (list of (T,1))."""
    E = len(cols)
    masks = []
    for i in range(E):
        rank = jnp.zeros_like(cols[i])
        for j in range(E):
            if j != i:
                rank = rank + (cols[j] > cols[i]).astype(jnp.float32)
        masks.append((rank < k).astype(jnp.float32))
    return masks


def _softmax_cols(cols):
    """Stable softmax over the expert axis, kept column-wise (lists of (T,1))."""
    m = cols[0]
    for c in cols[1:]:
        m = jnp.maximum(m, c)
    exps = [jnp.exp(c - m) for c in cols]
    den = exps[0]
    for e in exps[1:]:
        den = den + e
    inv = 1.0 / den
    return [e * inv for e in exps]


# =========================== fused Pallas kernel ===========================
def _mlp_stu_kernel(x_ref, hg_ref, wr_ref, br_ref,
                    wgs_ref, wus_ref, wds_ref,
                    wgt_ref, wut_ref, wdt_ref,
                    out_ref, teach_ref, rloss_ref, bloss_ref,
                    *, num_experts, top_k, expert_i):
    E, K, Ie = num_experts, top_k, expert_i
    f32 = jnp.float32

    x = x_ref[...].astype(f32)        # (T, H)
    hg = hg_ref[...].astype(f32)      # (T, H)
    wr = wr_ref[...].astype(f32)      # (H, E)
    br = br_ref[...].astype(f32)      # (1, E)
    wgs = wgs_ref[...].astype(f32)    # (H, E*Ie)   experts stacked along lanes
    wus = wus_ref[...].astype(f32)    # (H, E*Ie)

    # ---- routing on hidden_groundtruth: balance loss ----
    gate_hg = jnp.dot(hg, wr, preferred_element_type=f32) + br      # (T, E)
    g_cols = [gate_hg[:, e:e + 1] for e in range(E)]
    p_hg = _softmax_cols(g_cols)                                    # softmax(route1(hg))
    act_mask = _topk_mask_cols(p_hg, K)                             # set_top_k(y_soft, k)
    bal = act_mask[0] * p_hg[0]
    for e in range(1, E):
        bal = bal + act_mask[e] * p_hg[e]
    # torch.mean over (B,S,E) == mean_T(sum_E) / E
    bloss_ref[...] = jnp.mean(bal, keepdims=True) / E               # (1, 1)

    # ---- student experts on hidden_groundtruth ----
    g_hg = jnp.dot(hg, wgs, preferred_element_type=f32)             # (T, E*Ie)
    u_hg = jnp.dot(hg, wus, preferred_element_type=f32)
    h_hg = _silu(g_hg) * u_hg
    down_hg = [jnp.dot(h_hg[:, e * Ie:(e + 1) * Ie],
                       wds_ref[pl.ds(e * Ie, Ie), :].astype(f32),
                       preferred_element_type=f32)                  # (T, H) per expert
               for e in range(E)]

    # ---- teacher MLP on hidden_groundtruth ----
    gt = jnp.dot(hg, wgt_ref[...].astype(f32), preferred_element_type=f32)   # (T, I)
    ut = jnp.dot(hg, wut_ref[...].astype(f32), preferred_element_type=f32)
    teacher = jnp.dot(_silu(gt) * ut, wdt_ref[...].astype(f32),
                      preferred_element_type=f32)                            # (T, H)
    teach_ref[...] = teacher.astype(teach_ref.dtype)

    # ---- per-expert distill loss -> soft label -> route (distill) loss ----
    tgt = teacher * (1.0 / (E // K))                                 # teacher / 2
    tsl = [jnp.mean((down_hg[e] - tgt) ** 2, axis=-1, keepdims=True)  # (T,1)
           for e in range(E)]
    soft_label = _topk_mask_cols([-t for t in tsl], K)               # top-k of -loss
    p_lab = _softmax_cols(soft_label)
    # TODO(synk): DistillLoss undefined in source; token-mean KL(soft_label || gate).
    kl = p_lab[0] * (jnp.log(p_lab[0]) - jnp.log(p_hg[0]))
    for e in range(1, E):
        kl = kl + p_lab[e] * (jnp.log(p_lab[e]) - jnp.log(p_hg[e]))
    rloss_ref[...] = jnp.mean(kl, keepdims=True)                     # (1, 1)

    # ---- student path on x (actual MoE output with hard top-k gating) ----
    gate_x = jnp.dot(x, wr, preferred_element_type=f32) + br         # (T, E)
    gx_cols = [gate_x[:, e:e + 1] for e in range(E)]
    mask_x = _topk_mask_cols(gx_cols, K)     # topk(softmax(.)) == topk(.) ordering
    g_x = jnp.dot(x, wgs, preferred_element_type=f32)
    u_x = jnp.dot(x, wus, preferred_element_type=f32)
    h_x = _silu(g_x) * u_x
    acc = jnp.zeros_like(teacher)
    for e in range(E):
        d_e = jnp.dot(h_x[:, e * Ie:(e + 1) * Ie],
                      wds_ref[pl.ds(e * Ie, Ie), :].astype(f32),
                      preferred_element_type=f32)
        acc = acc + d_e * mask_x[e]
    out_ref[...] = (acc * float(E // K)).astype(out_ref.dtype)


# =========================== wrapper ===========================
def _prepare_weights(p):
    """One-time layout prep: stack expert weights along the lane / row axes."""
    E, H, Ie = NUM_EXPERTS, HIDDEN, EXPERT_I
    return dict(
        w_route=p['w_route'],
        b_route=p['b_route'].reshape(1, E),
        wg_s=jnp.transpose(p['wg'], (1, 0, 2)).reshape(H, E * Ie),
        wu_s=jnp.transpose(p['wu'], (1, 0, 2)).reshape(H, E * Ie),
        wd_s=p['wd'].reshape(E * Ie, H),
        wg_t=p['wg_t'], wu_t=p['wu_t'], wd_t=p['wd_t'],
    )


@jax.jit
def llama_mlp_stu_forward(prep, x, hidden_groundtruth):
    B, S, H = x.shape
    T = B * S
    E, Ie, I = NUM_EXPERTS, EXPERT_I, INTERMEDIATE
    x2 = x.reshape(T, H)
    hg2 = hidden_groundtruth.reshape(T, H)

    def full(shape):
        return pl.BlockSpec(shape, lambda i: (0,) * len(shape))

    kernel = functools.partial(_mlp_stu_kernel,
                               num_experts=E, top_k=TOP_K, expert_i=Ie)
    out, teacher, rloss, bloss = pl.pallas_call(
        kernel,
        grid=(1,),
        out_shape=(jax.ShapeDtypeStruct((T, H), x.dtype),
                   jax.ShapeDtypeStruct((T, H), x.dtype),
                   jax.ShapeDtypeStruct((1, 1), jnp.float32),
                   jax.ShapeDtypeStruct((1, 1), jnp.float32)),
        in_specs=[full((T, H)), full((T, H)),
                  full((H, E)), full((1, E)),
                  full((H, E * Ie)), full((H, E * Ie)), full((E * Ie, H)),
                  full((H, I)), full((H, I)), full((I, H))],
        out_specs=[full((T, H)), full((T, H)), full((1, 1)), full((1, 1))],
        compiler_params=pltpu.CompilerParams(dimension_semantics=("arbitrary",)),
    )(x2, hg2, prep['w_route'], prep['b_route'],
      prep['wg_s'], prep['wu_s'], prep['wd_s'],
      prep['wg_t'], prep['wu_t'], prep['wd_t'])

    return (out.reshape(B, S, H), rloss[0, 0], teacher.reshape(B, S, H), bloss[0, 0])


# =========================== pure-JAX reference ===========================
def init_params(key):
    ks = jax.random.split(key, 8)
    s = 0.05
    H, I, E, Ie = HIDDEN, INTERMEDIATE, NUM_EXPERTS, EXPERT_I
    p = {}
    p['w_route'] = jax.random.normal(ks[0], (H, E), jnp.float32) * s
    p['b_route'] = jax.random.normal(ks[1], (E,), jnp.float32) * s
    p['wg'] = jax.random.normal(ks[2], (E, H, Ie), jnp.float32) * s
    p['wu'] = jax.random.normal(ks[3], (E, H, Ie), jnp.float32) * s
    p['wd'] = jax.random.normal(ks[4], (E, Ie, H), jnp.float32) * s
    p['wg_t'] = jax.random.normal(ks[5], (H, I), jnp.float32) * s
    p['wu_t'] = jax.random.normal(ks[6], (H, I), jnp.float32) * s
    p['wd_t'] = jax.random.normal(ks[7], (I, H), jnp.float32) * s
    return p


def reference_forward(p, x, hidden_groundtruth):
    E, K = NUM_EXPERTS, TOP_K

    def silu(v):
        return v * jax.nn.sigmoid(v)

    def topk_mask(a, k):
        rank = jnp.sum((a[..., None, :] > a[..., :, None]).astype(jnp.float32), axis=-1)
        return (rank < k).astype(jnp.float32)

    with jax.default_matmul_precision("highest"):
        hg = hidden_groundtruth
        gate_hg = hg @ p['w_route'] + p['b_route']
        p_hg = jax.nn.softmax(gate_hg, axis=-1)
        bal_loss = jnp.mean(topk_mask(p_hg, K) * p_hg)

        down_hg = jnp.stack(
            [(silu(hg @ p['wg'][e]) * (hg @ p['wu'][e])) @ p['wd'][e] for e in range(E)],
            axis=-1)                                                       # (B,S,H,E)
        teacher = (silu(hg @ p['wg_t']) * (hg @ p['wu_t'])) @ p['wd_t']    # (B,S,H)
        tsl = jnp.stack(
            [jnp.mean((down_hg[..., e] - teacher / (E // K)) ** 2, axis=-1)
             for e in range(E)], axis=-1)                                  # (B,S,E)
        soft_label = topk_mask(-tsl, K)
        p_lab = jax.nn.softmax(soft_label, axis=-1)
        route_loss = jnp.mean(jnp.sum(p_lab * (jnp.log(p_lab) - jnp.log(p_hg)), axis=-1))

        gate_x = x @ p['w_route'] + p['b_route']
        mask_x = topk_mask(gate_x, K)
        down_x = jnp.stack(
            [(silu(x @ p['wg'][e]) * (x @ p['wu'][e])) @ p['wd'][e] for e in range(E)],
            axis=-1)
        out = jnp.einsum('bshe,bse->bsh', down_x, mask_x) * (E // K)
    return out, route_loss, teacher, bal_loss


if __name__ == "__main__":
    key = jax.random.PRNGKey(0)
    pkey, xkey, gkey = jax.random.split(key, 3)
    params = init_params(pkey)
    x = jax.random.normal(xkey, (BATCH, SEQ, HIDDEN), jnp.float32)
    hidden_groundtruth = jax.random.normal(gkey, (BATCH, SEQ, HIDDEN), jnp.float32)

    prep = _prepare_weights(params)
    out, route_loss, teacher, bal_loss = jax.block_until_ready(
        llama_mlp_stu_forward(prep, x, hidden_groundtruth))
    assert out.shape == (BATCH, SEQ, HIDDEN)
    assert teacher.shape == (BATCH, SEQ, HIDDEN)

    ref_out, ref_rl, ref_teacher, ref_bl = reference_forward(params, x, hidden_groundtruth)
    np.testing.assert_allclose(np.asarray(out), np.asarray(ref_out), atol=2e-3, rtol=2e-3)
    np.testing.assert_allclose(np.asarray(teacher), np.asarray(ref_teacher), atol=2e-3, rtol=2e-3)
    np.testing.assert_allclose(float(route_loss), float(ref_rl), atol=2e-3, rtol=2e-3)
    np.testing.assert_allclose(float(bal_loss), float(ref_bl), atol=2e-3, rtol=2e-3)
    print("KERNEL_OK")
</pallas_src>

<mosaic_0001>
module attributes {stable_mosaic.version = 11 : i64} {
  func.func @_mlp_stu_kernel(%arg0: i32, %arg1: memref<16x32xf32, #tpu.memory_space<vmem>>, %arg2: memref<16x32xf32, #tpu.memory_space<vmem>>, %arg3: memref<32x4xf32, #tpu.memory_space<vmem>>, %arg4: memref<1x4xf32, #tpu.memory_space<vmem>>, %arg5: memref<32x64xf32, #tpu.memory_space<vmem>>, %arg6: memref<32x64xf32, #tpu.memory_space<vmem>>, %arg7: memref<64x32xf32, #tpu.memory_space<vmem>>, %arg8: memref<32x64xf32, #tpu.memory_space<vmem>>, %arg9: memref<32x64xf32, #tpu.memory_space<vmem>>, %arg10: memref<64x32xf32, #tpu.memory_space<vmem>>, %arg11: memref<16x32xf32, #tpu.memory_space<vmem>>, %arg12: memref<16x32xf32, #tpu.memory_space<vmem>>, %arg13: memref<1x1xf32, #tpu.memory_space<vmem>>, %arg14: memref<1x1xf32, #tpu.memory_space<vmem>>) attributes {dimension_semantics = [#tpu.dimension_semantics<arbitrary>], iteration_bounds = array<i64: 1>, scalar_prefetch = 0 : i64, scratch_operands = 0 : i64, tpu.core_type = #tpu.core_type<tc>, window_params = [{pipeline_mode = #tpu.pipeline_mode<synchronous>, transform_indices = @transform_0, window_bounds = array<i64: 16, 32>}, {pipeline_mode = #tpu.pipeline_mode<synchronous>, transform_indices = @transform_1, window_bounds = array<i64: 16, 32>}, {pipeline_mode = #tpu.pipeline_mode<synchronous>, transform_indices = @transform_2, window_bounds = array<i64: 32, 4>}, {pipeline_mode = #tpu.pipeline_mode<synchronous>, transform_indices = @transform_3, window_bounds = array<i64: 1, 4>}, {pipeline_mode = #tpu.pipeline_mode<synchronous>, transform_indices = @transform_4, window_bounds = array<i64: 32, 64>}, {pipeline_mode = #tpu.pipeline_mode<synchronous>, transform_indices = @transform_5, window_bounds = array<i64: 32, 64>}, {pipeline_mode = #tpu.pipeline_mode<synchronous>, transform_indices = @transform_6, window_bounds = array<i64: 64, 32>}, {pipeline_mode = #tpu.pipeline_mode<synchronous>, transform_indices = @transform_7, window_bounds = array<i64: 32, 64>}, {pipeline_mode = #tpu.pipeline_mode<synchronous>, transform_indices = @transform_8, window_bounds = array<i64: 32, 64>}, {pipeline_mode = #tpu.pipeline_mode<synchronous>, transform_indices = @transform_9, window_bounds = array<i64: 64, 32>}, {pipeline_mode = #tpu.pipeline_mode<synchronous>, transform_indices = @transform_10, window_bounds = array<i64: 16, 32>}, {pipeline_mode = #tpu.pipeline_mode<synchronous>, transform_indices = @transform_11, window_bounds = array<i64: 16, 32>}, {pipeline_mode = #tpu.pipeline_mode<synchronous>, transform_indices = @transform_12, window_bounds = array<i64: 1, 1>}, {pipeline_mode = #tpu.pipeline_mode<synchronous>, transform_indices = @transform_13, window_bounds = array<i64: 1, 1>}]} {
    %c0 = arith.constant 0 : index
    %c0_0 = arith.constant 0 : index
    %0 = vector.load %arg1[%c0, %c0_0] : memref<16x32xf32, #tpu.memory_space<vmem>>, vector<16x32xf32>
    %c0_1 = arith.constant 0 : index
    %c0_2 = arith.constant 0 : index
    %1 = vector.load %arg2[%c0_1, %c0_2] : memref<16x32xf32, #tpu.memory_space<vmem>>, vector<16x32xf32>
    %c0_3 = arith.constant 0 : index
    %c0_4 = arith.constant 0 : index
    %2 = vector.load %arg3[%c0_3, %c0_4] : memref<32x4xf32, #tpu.memory_space<vmem>>, vector<32x4xf32>
    %c0_5 = arith.constant 0 : index
    %c0_6 = arith.constant 0 : index
    %3 = vector.load %arg4[%c0_5, %c0_6] : memref<1x4xf32, #tpu.memory_space<vmem>>, vector<1x4xf32>
    %c0_7 = arith.constant 0 : index
    %c0_8 = arith.constant 0 : index
    %4 = vector.load %arg5[%c0_7, %c0_8] : memref<32x64xf32, #tpu.memory_space<vmem>>, vector<32x64xf32>
    %c0_9 = arith.constant 0 : index
    %c0_10 = arith.constant 0 : index
    %5 = vector.load %arg6[%c0_9, %c0_10] : memref<32x64xf32, #tpu.memory_space<vmem>>, vector<32x64xf32>
    %cst = arith.constant dense<0.000000e+00> : vector<16x4xf32>
    %6 = tpu.matmul %1, %2, %cst {dimension_numbers = #tpu.dot_dimension_numbers<[1], [0], [0], [1], [0, 0, 1, 1], [], []>} : vector<16x32xf32>, vector<32x4xf32>, vector<16x4xf32> -> vector<16x4xf32>
    %7 = vector.broadcast %3 : vector<1x4xf32> to vector<16x4xf32>
    %8 = arith.addf %6, %7 : vector<16x4xf32>
    %9 = vector.extract_strided_slice %8 {offsets = [0, 0], sizes = [16, 1], strides = [1, 1]} : vector<16x4xf32> to vector<16x1xf32>
    %10 = vector.extract_strided_slice %8 {offsets = [0, 1], sizes = [16, 1], strides = [1, 1]} : vector<16x4xf32> to vector<16x1xf32>
    %11 = vector.extract_strided_slice %8 {offsets = [0, 2], sizes = [16, 1], strides = [1, 1]} : vector<16x4xf32> to vector<16x1xf32>
    %12 = vector.extract_strided_slice %8 {offsets = [0, 3], sizes = [16, 1], strides = [1, 1]} : vector<16x4xf32> to vector<16x1xf32>
    %13 = arith.maximumf %9, %10 : vector<16x1xf32>
    %14 = arith.maximumf %13, %11 : vector<16x1xf32>
    %15 = arith.maximumf %14, %12 : vector<16x1xf32>
    %16 = arith.subf %9, %15 : vector<16x1xf32>
    %17 = math.exp %16 : vector<16x1xf32>
    %18 = arith.subf %10, %15 : vector<16x1xf32>
    %19 = math.exp %18 : vector<16x1xf32>
    %20 = arith.subf %11, %15 : vector<16x1xf32>
    %21 = math.exp %20 : vector<16x1xf32>
    %22 = arith.subf %12, %15 : vector<16x1xf32>
    %23 = math.exp %22 : vector<16x1xf32>
    %24 = arith.addf %17, %19 : vector<16x1xf32>
    %25 = arith.addf %24, %21 : vector<16x1xf32>
    %26 = arith.addf %25, %23 : vector<16x1xf32>
    %cst_11 = arith.constant 1.000000e+00 : f32
    %27 = vector.broadcast %cst_11 : f32 to vector<16x1xf32>
    %28 = arith.divf %27, %26 : vector<16x1xf32>
    %29 = arith.mulf %17, %28 : vector<16x1xf32>
    %30 = arith.mulf %19, %28 : vector<16x1xf32>
    %31 = arith.mulf %21, %28 : vector<16x1xf32>
    %32 = arith.mulf %23, %28 : vector<16x1xf32>
    %cst_12 = arith.constant 0.000000e+00 : f32
    %33 = vector.broadcast %cst_12 : f32 to vector<16x1xf32>
    %34 = arith.cmpf ogt, %30, %29 : vector<16x1xf32>
    %35 = arith.extui %34 : vector<16x1xi1> to vector<16x1xi32>
    %36 = arith.sitofp %35 : vector<16x1xi32> to vector<16x1xf32>
    %37 = arith.addf %33, %36 : vector<16x1xf32>
    %38 = arith.cmpf ogt, %31, %29 : vector<16x1xf32>
    %39 = arith.extui %38 : vector<16x1xi1> to vector<16x1xi32>
    %40 = arith.sitofp %39 : vector<16x1xi32> to vector<16x1xf32>
    %41 = arith.addf %37, %40 : vector<16x1xf32>
    %42 = arith.cmpf ogt, %32, %29 : vector<16x1xf32>
    %43 = arith.extui %42 : vector<16x1xi1> to vector<16x1xi32>
    %44 = arith.sitofp %43 : vector<16x1xi32> to vector<16x1xf32>
    %45 = arith.addf %41, %44 : vector<16x1xf32>
    %cst_13 = arith.constant 2.000000e+00 : f32
    %46 = vector.broadcast %cst_13 : f32 to vector<16x1xf32>
    %47 = arith.cmpf olt, %45, %46 : vector<16x1xf32>
    %48 = arith.extui %47 : vector<16x1xi1> to vector<16x1xi32>
    %49 = arith.sitofp %48 : vector<16x1xi32> to vector<16x1xf32>
    %cst_14 = arith.constant 0.000000e+00 : f32
    %50 = vector.broadcast %cst_14 : f32 to vector<16x1xf32>
    %51 = arith.cmpf ogt, %29, %30 : vector<16x1xf32>
    %52 = arith.extui %51 : vector<16x1xi1> to vector<16x1xi32>
    %53 = arith.sitofp %52 : vector<16x1xi32> to vector<16x1xf32>
    %54 = arith.addf %50, %53 : vector<16x1xf32>
    %55 = arith.cmpf ogt, %31, %30 : vector<16x1xf32>
    %56 = arith.extui %55 : vector<16x1xi1> to vector<16x1xi32>
    %57 = arith.sitofp %56 : vector<16x1xi32> to vector<16x1xf32>
    %58 = arith.addf %54, %57 : vector<16x1xf32>
    %59 = arith.cmpf ogt, %32, %30 : vector<16x1xf32>
    %60 = arith.extui %59 : vector<16x1xi1> to vector<16x1xi32>
    %61 = arith.sitofp %60 : vector<16x1xi32> to vector<16x1xf32>
    %62 = arith.addf %58, %61 : vector<16x1xf32>
    %cst_15 = arith.constant 2.000000e+00 : f32
    %63 = vector.broadcast %cst_15 : f32 to vector<16x1xf32>
    %64 = arith.cmpf olt, %62, %63 : vector<16x1xf32>
    %65 = arith.extui %64 : vector<16x1xi1> to vector<16x1xi32>
    %66 = arith.sitofp %65 : vector<16x1xi32> to vector<16x1xf32>
    %cst_16 = arith.constant 0.000000e+00 : f32
    %67 = vector.broadcast %cst_16 : f32 to vector<16x1xf32>
    %68 = arith.cmpf ogt, %29, %31 : vector<16x1xf32>
    %69 = arith.extui %68 : vector<16x1xi1> to vector<16x1xi32>
    %70 = arith.sitofp %69 : vector<16x1xi32> to vector<16x1xf32>
    %71 = arith.addf %67, %70 : vector<16x1xf32>
    %72 = arith.cmpf ogt, %30, %31 : vector<16x1xf32>
    %73 = arith.extui %72 : vector<16x1xi1> to vector<16x1xi32>
    %74 = arith.sitofp %73 : vector<16x1xi32> to vector<16x1xf32>
    %75 = arith.addf %71, %74 : vector<16x1xf32>
    %76 = arith.cmpf ogt, %32, %31 : vector<16x1xf32>
    %77 = arith.extui %76 : vector<16x1xi1> to vector<16x1xi32>
    %78 = arith.sitofp %77 : vector<16x1xi32> to vector<16x1xf32>
    %79 = arith.addf %75, %78 : vector<16x1xf32>
    %cst_17 = arith.constant 2.000000e+00 : f32
    %80 = vector.broadcast %cst_17 : f32 to vector<16x1xf32>
    %81 = arith.cmpf olt, %79, %80 : vector<16x1xf32>
    %82 = arith.extui %81 : vector<16x1xi1> to vector<16x1xi32>
    %83 = arith.sitofp %82 : vector<16x1xi32> to vector<16x1xf32>
    %cst_18 = arith.constant 0.000000e+00 : f32
    %84 = vector.broadcast %cst_18 : f32 to vector<16x1xf32>
    %85 = arith.cmpf ogt, %29, %32 : vector<16x1xf32>
    %86 = arith.extui %85 : vector<16x1xi1> to vector<16x1xi32>
    %87 = arith.sitofp %86 : vector<16x1xi32> to vector<16x1xf32>
    %88 = arith.addf %84, %87 : vector<16x1xf32>
    %89 = arith.cmpf ogt, %30, %32 : vector<16x1xf32>
    %90 = arith.extui %89 : vector<16x1xi1> to vector<16x1xi32>
    %91 = arith.sitofp %90 : vector<16x1xi32> to vector<16x1xf32>
    %92 = arith.addf %88, %91 : vector<16x1xf32>
    %93 = arith.cmpf ogt, %31, %32 : vector<16x1xf32>
    %94 = arith.extui %93 : vector<16x1xi1> to vector<16x1xi32>
    %95 = arith.sitofp %94 : vector<16x1xi32> to vector<16x1xf32>
    %96 = arith.addf %92, %95 : vector<16x1xf32>
    %cst_19 = arith.constant 2.000000e+00 : f32
    %97 = vector.broadcast %cst_19 : f32 to vector<16x1xf32>
    %98 = arith.cmpf olt, %96, %97 : vector<16x1xf32>
    %99 = arith.extui %98 : vector<16x1xi1> to vector<16x1xi32>
    %100 = arith.sitofp %99 : vector<16x1xi32> to vector<16x1xf32>
    %101 = arith.mulf %49, %29 : vector<16x1xf32>
    %102 = arith.mulf %66, %30 : vector<16x1xf32>
    %103 = arith.addf %101, %102 : vector<16x1xf32>
    %104 = arith.mulf %83, %31 : vector<16x1xf32>
    %105 = arith.addf %103, %104 : vector<16x1xf32>
    %106 = arith.mulf %100, %32 : vector<16x1xf32>
    %107 = arith.addf %105, %106 : vector<16x1xf32>
    %108 = vector.shape_cast %107 : vector<16x1xf32> to vector<1x16x1xf32>
    %cst_20 = arith.constant dense<0.000000e+00> : vector<1xf32>
    %109 = vector.multi_reduction <add>, %108, %cst_20 [1, 2] : vector<1x16x1xf32> to vector<1xf32>
    %110 = vector.shape_cast %109 : vector<1xf32> to vector<1x1x1xf32>
    %111 = vector.extract %110[0, 0, 0] : f32 from vector<1x1x1xf32>
    %112 = vector.broadcast %111 : f32 to vector<1x1xf32>
    %cst_21 = arith.constant 1.600000e+01 : f32
    %113 = vector.broadcast %cst_21 : f32 to vector<1x1xf32>
    %114 = arith.divf %112, %113 : vector<1x1xf32>
    %cst_22 = arith.constant 4.000000e+00 : f32
    %115 = vector.broadcast %cst_22 : f32 to vector<1x1xf32>
    %116 = arith.divf %114, %115 : vector<1x1xf32>
    %c0_23 = arith.constant 0 : index
    %c0_24 = arith.constant 0 : index
    %117 = vector.load %arg14[%c0_23, %c0_24] : memref<1x1xf32, #tpu.memory_space<vmem>>, vector<1x1xf32>
    tpu.vector_store %arg14[%c0_23, %c0_24], %116 {strides = array<i32>} : memref<1x1xf32, #tpu.memory_space<vmem>>, vector<1x1xf32>,
    %cst_25 = arith.constant dense<0.000000e+00> : vector<16x64xf32>
    %118 = tpu.matmul %1, %4, %cst_25 {dimension_numbers = #tpu.dot_dimension_numbers<[1], [0], [0], [1], [0, 0, 1, 1], [], []>} : vector<16x32xf32>, vector<32x64xf32>, vector<16x64xf32> -> vector<16x64xf32>
    %cst_26 = arith.constant dense<0.000000e+00> : vector<16x64xf32>
    %119 = tpu.matmul %1, %5, %cst_26 {dimension_numbers = #tpu.dot_dimension_numbers<[1], [0], [0], [1], [0, 0, 1, 1], [], []>} : vector<16x32xf32>, vector<32x64xf32>, vector<16x64xf32> -> vector<16x64xf32>
    %120 = arith.negf %118 : vector<16x64xf32>
    %121 = math.exp %120 : vector<16x64xf32>
    %cst_27 = arith.constant 1.000000e+00 : f32
    %122 = vector.broadcast %cst_27 : f32 to vector<16x64xf32>
    %123 = arith.addf %122, %121 : vector<16x64xf32>
    %124 = arith.divf %122, %123 : vector<16x64xf32>
    %125 = arith.mulf %118, %124 : vector<16x64xf32>
    %126 = arith.mulf %125, %119 : vector<16x64xf32>
    %127 = vector.extract_strided_slice %126 {offsets = [0, 0], sizes = [16, 16], strides = [1, 1]} : vector<16x64xf32> to vector<16x16xf32>
    %c0_28 = arith.constant 0 : index
    %c0_29 = arith.constant 0 : index
    %128 = vector.load %arg7[%c0_28, %c0_29] : memref<64x32xf32, #tpu.memory_space<vmem>>, vector<16x32xf32>
    %cst_30 = arith.constant dense<0.000000e+00> : vector<16x32xf32>
    %129 = tpu.matmul %127, %128, %cst_30 {dimension_numbers = #tpu.dot_dimension_numbers<[1], [0], [0], [1], [0, 0, 1, 1], [], []>} : vector<16x16xf32>, vector<16x32xf32>, vector<16x32xf32> -> vector<16x32xf32>
    %130 = vector.extract_strided_slice %126 {offsets = [0, 16], sizes = [16, 16], strides = [1, 1]} : vector<16x64xf32> to vector<16x16xf32>
    %c16 = arith.constant 16 : index
    %c0_31 = arith.constant 0 : index
    %131 = vector.load %arg7[%c16, %c0_31] : memref<64x32xf32, #tpu.memory_space<vmem>>, vector<16x32xf32>
    %cst_32 = arith.constant dense<0.000000e+00> : vector<16x32xf32>
    %132 = tpu.matmul %130, %131, %cst_32 {dimension_numbers = #tpu.dot_dimension_numbers<[1], [0], [0], [1], [0, 0, 1, 1], [], []>} : vector<16x16xf32>, vector<16x32xf32>, vector<16x32xf32> -> vector<16x32xf32>
    %133 = vector.extract_strided_slice %126 {offsets = [0, 32], sizes = [16, 16], strides = [1, 1]} : vector<16x64xf32> to vector<16x16xf32>
    %c32 = arith.constant 32 : index
    %c0_33 = arith.constant 0 : index
    %134 = vector.load %arg7[%c32, %c0_33] : memref<64x32xf32, #tpu.memory_space<vmem>>, vector<16x32xf32>
    %cst_34 = arith.constant dense<0.000000e+00> : vector<16x32xf32>
    %135 = tpu.matmul %133, %134, %cst_34 {dimension_numbers = #tpu.dot_dimension_numbers<[1], [0], [0], [1], [0, 0, 1, 1], [], []>} : vector<16x16xf32>, vector<16x32xf32>, vector<16x32xf32> -> vector<16x32xf32>
    %136 = vector.extract_strided_slice %126 {offsets = [0, 48], sizes = [16, 16], strides = [1, 1]} : vector<16x64xf32> to vector<16x16xf32>
    %c48 = arith.constant 48 : index
    %c0_35 = arith.constant 0 : index
    %137 = vector.load %arg7[%c48, %c0_35] : memref<64x32xf32, #tpu.memory_space<vmem>>, vector<16x32xf32>
    %cst_36 = arith.constant dense<0.000000e+00> : vector<16x32xf32>
    %138 = tpu.matmul %136, %137, %cst_36 {dimension_numbers = #tpu.dot_dimension_numbers<[1], [0], [0], [1], [0, 0, 1, 1], [], []>} : vector<16x16xf32>, vector<16x32xf32>, vector<16x32xf32> -> vector<16x32xf32>
    %c0_37 = arith.constant 0 : index
    %c0_38 = arith.constant 0 : index
    %139 = vector.load %arg8[%c0_37, %c0_38] : memref<32x64xf32, #tpu.memory_space<vmem>>, vector<32x64xf32>
    %cst_39 = arith.constant dense<0.000000e+00> : vector<16x64xf32>
    %140 = tpu.matmul %1, %139, %cst_39 {dimension_numbers = #tpu.dot_dimension_numbers<[1], [0], [0], [1], [0, 0, 1, 1], [], []>} : vector<16x32xf32>, vector<32x64xf32>, vector<16x64xf32> -> vector<16x64xf32>
    %c0_40 = arith.constant 0 : index
    %c0_41 = arith.constant 0 : index
    %141 = vector.load %arg9[%c0_40, %c0_41] : memref<32x64xf32, #tpu.memory_space<vmem>>, vector<32x64xf32>
    %cst_42 = arith.constant dense<0.000000e+00> : vector<16x64xf32>
    %142 = tpu.matmul %1, %141, %cst_42 {dimension_numbers = #tpu.dot_dimension_numbers<[1], [0], [0], [1], [0, 0, 1, 1], [], []>} : vector<16x32xf32>, vector<32x64xf32>, vector<16x64xf32> -> vector<16x64xf32>
    %143 = arith.negf %140 : vector<16x64xf32>
    %144 = math.exp %143 : vector<16x64xf32>
    %cst_43 = arith.constant 1.000000e+00 : f32
    %145 = vector.broadcast %cst_43 : f32 to vector<16x64xf32>
    %146 = arith.addf %145, %144 : vector<16x64xf32>
    %147 = arith.divf %145, %146 : vector<16x64xf32>
    %148 = arith.mulf %140, %147 : vector<16x64xf32>
    %149 = arith.mulf %148, %142 : vector<16x64xf32>
    %c0_44 = arith.constant 0 : index
    %c0_45 = arith.constant 0 : index
    %150 = vector.load %arg10[%c0_44, %c0_45] : memref<64x32xf32, #tpu.memory_space<vmem>>, vector<64x32xf32>
    %cst_46 = arith.constant dense<0.000000e+00> : vector<16x32xf32>
    %151 = tpu.matmul %149, %150, %cst_46 {dimension_numbers = #tpu.dot_dimension_numbers<[1], [0], [0], [1], [0, 0, 1, 1], [], []>} : vector<16x64xf32>, vector<64x32xf32>, vector<16x32xf32> -> vector<16x32xf32>
    %c0_47 = arith.constant 0 : index
    %c0_48 = arith.constant 0 : index
    %152 = vector.load %arg12[%c0_47, %c0_48] : memref<16x32xf32, #tpu.memory_space<vmem>>, vector<16x32xf32>
    tpu.vector_store %arg12[%c0_47, %c0_48], %151 {strides = array<i32>} : memref<16x32xf32, #tpu.memory_space<vmem>>, vector<16x32xf32>,
    %cst_49 = arith.constant 5.000000e-01 : f32
    %153 = vector.broadcast %cst_49 : f32 to vector<16x32xf32>
    %154 = arith.mulf %151, %153 : vector<16x32xf32>
    %155 = arith.subf %129, %154 : vector<16x32xf32>
    %156 = arith.mulf %155, %155 : vector<16x32xf32>
    %cst_50 = arith.constant dense<0.000000e+00> : vector<16xf32>
    %157 = vector.multi_reduction <add>, %156, %cst_50 [1] : vector<16x32xf32> to vector<16xf32>
    %158 = vector.shape_cast %157 : vector<16xf32> to vector<16x1xf32>
    %cst_51 = arith.constant 3.200000e+01 : f32
    %159 = vector.broadcast %cst_51 : f32 to vector<16x1xf32>
    %160 = arith.divf %158, %159 : vector<16x1xf32>
    %161 = arith.subf %132, %154 : vector<16x32xf32>
    %162 = arith.mulf %161, %161 : vector<16x32xf32>
    %cst_52 = arith.constant dense<0.000000e+00> : vector<16xf32>
    %163 = vector.multi_reduction <add>, %162, %cst_52 [1] : vector<16x32xf32> to vector<16xf32>
    %164 = vector.shape_cast %163 : vector<16xf32> to vector<16x1xf32>
    %cst_53 = arith.constant 3.200000e+01 : f32
    %165 = vector.broadcast %cst_53 : f32 to vector<16x1xf32>
    %166 = arith.divf %164, %165 : vector<16x1xf32>
    %167 = arith.subf %135, %154 : vector<16x32xf32>
    %168 = arith.mulf %167, %167 : vector<16x32xf32>
    %cst_54 = arith.constant dense<0.000000e+00> : vector<16xf32>
    %169 = vector.multi_reduction <add>, %168, %cst_54 [1] : vector<16x32xf32> to vector<16xf32>
    %170 = vector.shape_cast %169 : vector<16xf32> to vector<16x1xf32>
    %cst_55 = arith.constant 3.200000e+01 : f32
    %171 = vector.broadcast %cst_55 : f32 to vector<16x1xf32>
    %172 = arith.divf %170, %171 : vector<16x1xf32>
    %173 = arith.subf %138, %154 : vector<16x32xf32>
    %174 = arith.mulf %173, %173 : vector<16x32xf32>
    %cst_56 = arith.constant dense<0.000000e+00> : vector<16xf32>
    %175 = vector.multi_reduction <add>, %174, %cst_56 [1] : vector<16x32xf32> to vector<16xf32>
    %176 = vector.shape_cast %175 : vector<16xf32> to vector<16x1xf32>
    %cst_57 = arith.constant 3.200000e+01 : f32
    %177 = vector.broadcast %cst_57 : f32 to vector<16x1xf32>
    %178 = arith.divf %176, %177 : vector<16x1xf32>
    %cst_58 = arith.constant 0.000000e+00 : f32
    %179 = vector.broadcast %cst_58 : f32 to vector<16x1xf32>
    %180 = arith.subf %179, %160 : vector<16x1xf32>
    %cst_59 = arith.constant 0.000000e+00 : f32
    %181 = vector.broadcast %cst_59 : f32 to vector<16x1xf32>
    %182 = arith.subf %181, %166 : vector<16x1xf32>
    %cst_60 = arith.constant 0.000000e+00 : f32
    %183 = vector.broadcast %cst_60 : f32 to vector<16x1xf32>
    %184 = arith.subf %183, %172 : vector<16x1xf32>
    %cst_61 = arith.constant 0.000000e+00 : f32
    %185 = vector.broadcast %cst_61 : f32 to vector<16x1xf32>
    %186 = arith.subf %185, %178 : vector<16x1xf32>
    %cst_62 = arith.constant 0.000000e+00 : f32
    %187 = vector.broadcast %cst_62 : f32 to vector<16x1xf32>
    %188 = arith.cmpf ogt, %182, %180 : vector<16x1xf32>
    %189 = arith.extui %188 : vector<16x1xi1> to vector<16x1xi32>
    %190 = arith.sitofp %189 : vector<16x1xi32> to vector<16x1xf32>
    %191 = arith.addf %187, %190 : vector<16x1xf32>
    %192 = arith.cmpf ogt, %184, %180 : vector<16x1xf32>
    %193 = arith.extui %192 : vector<16x1xi1> to vector<16x1xi32>
    %194 = arith.sitofp %193 : vector<16x1xi32> to vector<16x1xf32>
    %195 = arith.addf %191, %194 : vector<16x1xf32>
    %196 = arith.cmpf ogt, %186, %180 : vector<16x1xf32>
    %197 = arith.extui %196 : vector<16x1xi1> to vector<16x1xi32>
    %198 = arith.sitofp %197 : vector<16x1xi32> to vector<16x1xf32>
    %199 = arith.addf %195, %198 : vector<16x1xf32>
    %cst_63 = arith.constant 2.000000e+00 : f32
    %200 = vector.broadcast %cst_63 : f32 to vector<16x1xf32>
    %201 = arith.cmpf olt, %199, %200 : vector<16x1xf32>
    %202 = arith.extui %201 : vector<16x1xi1> to vector<16x1xi32>
    %203 = arith.sitofp %202 : vector<16x1xi32> to vector<16x1xf32>
    %cst_64 = arith.constant 0.000000e+00 : f32
    %204 = vector.broadcast %cst_64 : f32 to vector<16x1xf32>
    %205 = arith.cmpf ogt, %180, %182 : vector<16x1xf32>
    %206 = arith.extui %205 : vector<16x1xi1> to vector<16x1xi32>
    %207 = arith.sitofp %206 : vector<16x1xi32> to vector<16x1xf32>
    %208 = arith.addf %204, %207 : vector<16x1xf32>
    %209 = arith.cmpf ogt, %184, %182 : vector<16x1xf32>
    %210 = arith.extui %209 : vector<16x1xi1> to vector<16x1xi32>
    %211 = arith.sitofp %210 : vector<16x1xi32> to vector<16x1xf32>
    %212 = arith.addf %208, %211 : vector<16x1xf32>
    %213 = arith.cmpf ogt, %186, %182 : vector<16x1xf32>
    %214 = arith.extui %213 : vector<16x1xi1> to vector<16x1xi32>
    %215 = arith.sitofp %214 : vector<16x1xi32> to vector<16x1xf32>
    %216 = arith.addf %212, %215 : vector<16x1xf32>
    %cst_65 = arith.constant 2.000000e+00 : f32
    %217 = vector.broadcast %cst_65 : f32 to vector<16x1xf32>
    %218 = arith.cmpf olt, %216, %217 : vector<16x1xf32>
    %219 = arith.extui %218 : vector<16x1xi1> to vector<16x1xi32>
    %220 = arith.sitofp %219 : vector<16x1xi32> to vector<16x1xf32>
    %cst_66 = arith.constant 0.000000e+00 : f32
    %221 = vector.broadcast %cst_66 : f32 to vector<16x1xf32>
    %222 = arith.cmpf ogt, %180, %184 : vector<16x1xf32>
    %223 = arith.extui %222 : vector<16x1xi1> to vector<16x1xi32>
    %224 = arith.sitofp %223 : vector<16x1xi32> to vector<16x1xf32>
    %225 = arith.addf %221, %224 : vector<16x1xf32>
    %226 = arith.cmpf ogt, %182, %184 : vector<16x1xf32>
    %227 = arith.extui %226 : vector<16x1xi1> to vector<16x1xi32>
    %228 = arith.sitofp %227 : vector<16x1xi32> to vector<16x1xf32>
    %229 = arith.addf %225, %228 : vector<16x1xf32>
    %230 = arith.cmpf ogt, %186, %184 : vector<16x1xf32>
    %231 = arith.extui %230 : vector<16x1xi1> to vector<16x1xi32>
    %232 = arith.sitofp %231 : vector<16x1xi32> to vector<16x1xf32>
    %233 = arith.addf %229, %232 : vector<16x1xf32>
    %cst_67 = arith.constant 2.000000e+00 : f32
    %234 = vector.broadcast %cst_67 : f32 to vector<16x1xf32>
    %235 = arith.cmpf olt, %233, %234 : vector<16x1xf32>
    %236 = arith.extui %235 : vector<16x1xi1> to vector<16x1xi32>
    %237 = arith.sitofp %236 : vector<16x1xi32> to vector<16x1xf32>
    %cst_68 = arith.constant 0.000000e+00 : f32
    %238 = vector.broadcast %cst_68 : f32 to vector<16x1xf32>
    %239 = arith.cmpf ogt, %180, %186 : vector<16x1xf32>
    %240 = arith.extui %239 : vector<16x1xi1> to vector<16x1xi32>
    %241 = arith.sitofp %240 : vector<16x1xi32> to vector<16x1xf32>
    %242 = arith.addf %238, %241 : vector<16x1xf32>
    %243 = arith.cmpf ogt, %182, %186 : vector<16x1xf32>
    %244 = arith.extui %243 : vector<16x1xi1> to vector<16x1xi32>
    %245 = arith.sitofp %244 : vector<16x1xi32> to vector<16x1xf32>
    %246 = arith.addf %242, %245 : vector<16x1xf32>
    %247 = arith.cmpf ogt, %184, %186 : vector<16x1xf32>
    %248 = arith.extui %247 : vector<16x1xi1> to vector<16x1xi32>
    %249 = arith.sitofp %248 : vector<16x1xi32> to vector<16x1xf32>
    %250 = arith.addf %246, %249 : vector<16x1xf32>
    %cst_69 = arith.constant 2.000000e+00 : f32
    %251 = vector.broadcast %cst_69 : f32 to vector<16x1xf32>
    %252 = arith.cmpf olt, %250, %251 : vector<16x1xf32>
    %253 = arith.extui %252 : vector<16x1xi1> to vector<16x1xi32>
    %254 = arith.sitofp %253 : vector<16x1xi32> to vector<16x1xf32>
    %255 = arith.maximumf %203, %220 : vector<16x1xf32>
    %256 = arith.maximumf %255, %237 : vector<16x1xf32>
    %257 = arith.maximumf %256, %254 : vector<16x1xf32>
    %258 = arith.subf %203, %257 : vector<16x1xf32>
    %259 = math.exp %258 : vector<16x1xf32>
    %260 = arith.subf %220, %257 : vector<16x1xf32>
    %261 = math.exp %260 : vector<16x1xf32>
    %262 = arith.subf %237, %257 : vector<16x1xf32>
    %263 = math.exp %262 : vector<16x1xf32>
    %264 = arith.subf %254, %257 : vector<16x1xf32>
    %265 = math.exp %264 : vector<16x1xf32>
    %266 = arith.addf %259, %261 : vector<16x1xf32>
    %267 = arith.addf %266, %263 : vector<16x1xf32>
    %268 = arith.addf %267, %265 : vector<16x1xf32>
    %cst_70 = arith.constant 1.000000e+00 : f32
    %269 = vector.broadcast %cst_70 : f32 to vector<16x1xf32>
    %270 = arith.divf %269, %268 : vector<16x1xf32>
    %271 = arith.mulf %259, %270 : vector<16x1xf32>
    %272 = arith.mulf %261, %270 : vector<16x1xf32>
    %273 = arith.mulf %263, %270 : vector<16x1xf32>
    %274 = arith.mulf %265, %270 : vector<16x1xf32>
    %275 = math.log %271 : vector<16x1xf32>
    %276 = math.log %29 : vector<16x1xf32>
    %277 = arith.subf %275, %276 : vector<16x1xf32>
    %278 = arith.mulf %271, %277 : vector<16x1xf32>
    %279 = math.log %272 : vector<16x1xf32>
    %280 = math.log %30 : vector<16x1xf32>
    %281 = arith.subf %279, %280 : vector<16x1xf32>
    %282 = arith.mulf %272, %281 : vector<16x1xf32>
    %283 = arith.addf %278, %282 : vector<16x1xf32>
    %284 = math.log %273 : vector<16x1xf32>
    %285 = math.log %31 : vector<16x1xf32>
    %286 = arith.subf %284, %285 : vector<16x1xf32>
    %287 = arith.mulf %273, %286 : vector<16x1xf32>
    %288 = arith.addf %283, %287 : vector<16x1xf32>
    %289 = math.log %274 : vector<16x1xf32>
    %290 = math.log %32 : vector<16x1xf32>
    %291 = arith.subf %289, %290 : vector<16x1xf32>
    %292 = arith.mulf %274, %291 : vector<16x1xf32>
    %293 = arith.addf %288, %292 : vector<16x1xf32>
    %294 = vector.shape_cast %293 : vector<16x1xf32> to vector<1x16x1xf32>
    %cst_71 = arith.constant dense<0.000000e+00> : vector<1xf32>
    %295 = vector.multi_reduction <add>, %294, %cst_71 [1, 2] : vector<1x16x1xf32> to vector<1xf32>
    %296 = vector.shape_cast %295 : vector<1xf32> to vector<1x1x1xf32>
    %297 = vector.extract %296[0, 0, 0] : f32 from vector<1x1x1xf32>
    %298 = vector.broadcast %297 : f32 to vector<1x1xf32>
    %cst_72 = arith.constant 1.600000e+01 : f32
    %299 = vector.broadcast %cst_72 : f32 to vector<1x1xf32>
    %300 = arith.divf %298, %299 : vector<1x1xf32>
    %c0_73 = arith.constant 0 : index
    %c0_74 = arith.constant 0 : index
    %301 = vector.load %arg13[%c0_73, %c0_74] : memref<1x1xf32, #tpu.memory_space<vmem>>, vector<1x1xf32>
    tpu.vector_store %arg13[%c0_73, %c0_74], %300 {strides = array<i32>} : memref<1x1xf32, #tpu.memory_space<vmem>>, vector<1x1xf32>,
    %cst_75 = arith.constant dense<0.000000e+00> : vector<16x4xf32>
    %302 = tpu.matmul %0, %2, %cst_75 {dimension_numbers = #tpu.dot_dimension_numbers<[1], [0], [0], [1], [0, 0, 1, 1], [], []>} : vector<16x32xf32>, vector<32x4xf32>, vector<16x4xf32> -> vector<16x4xf32>
    %303 = vector.broadcast %3 : vector<1x4xf32> to vector<16x4xf32>
    %304 = arith.addf %302, %303 : vector<16x4xf32>
    %305 = vector.extract_strided_slice %304 {offsets = [0, 0], sizes = [16, 1], strides = [1, 1]} : vector<16x4xf32> to vector<16x1xf32>
    %306 = vector.extract_strided_slice %304 {offsets = [0, 1], sizes = [16, 1], strides = [1, 1]} : vector<16x4xf32> to vector<16x1xf32>
    %307 = vector.extract_strided_slice %304 {offsets = [0, 2], sizes = [16, 1], strides = [1, 1]} : vector<16x4xf32> to vector<16x1xf32>
    %308 = vector.extract_strided_slice %304 {offsets = [0, 3], sizes = [16, 1], strides = [1, 1]} : vector<16x4xf32> to vector<16x1xf32>
    %cst_76 = arith.constant 0.000000e+00 : f32
    %309 = vector.broadcast %cst_76 : f32 to vector<16x1xf32>
    %310 = arith.cmpf ogt, %306, %305 : vector<16x1xf32>
    %311 = arith.extui %310 : vector<16x1xi1> to vector<16x1xi32>
    %312 = arith.sitofp %311 : vector<16x1xi32> to vector<16x1xf32>
    %313 = arith.addf %309, %312 : vector<16x1xf32>
    %314 = arith.cmpf ogt, %307, %305 : vector<16x1xf32>
    %315 = arith.extui %314 : vector<16x1xi1> to vector<16x1xi32>
    %316 = arith.sitofp %315 : vector<16x1xi32> to vector<16x1xf32>
    %317 = arith.addf %313, %316 : vector<16x1xf32>
    %318 = arith.cmpf ogt, %308, %305 : vector<16x1xf32>
    %319 = arith.extui %318 : vector<16x1xi1> to vector<16x1xi32>
    %320 = arith.sitofp %319 : vector<16x1xi32> to vector<16x1xf32>
    %321 = arith.addf %317, %320 : vector<16x1xf32>
    %cst_77 = arith.constant 2.000000e+00 : f32
    %322 = vector.broadcast %cst_77 : f32 to vector<16x1xf32>
    %323 = arith.cmpf olt, %321, %322 : vector<16x1xf32>
    %324 = arith.extui %323 : vector<16x1xi1> to vector<16x1xi32>
    %325 = arith.sitofp %324 : vector<16x1xi32> to vector<16x1xf32>
    %cst_78 = arith.constant 0.000000e+00 : f32
    %326 = vector.broadcast %cst_78 : f32 to vector<16x1xf32>
    %327 = arith.cmpf ogt, %305, %306 : vector<16x1xf32>
    %328 = arith.extui %327 : vector<16x1xi1> to vector<16x1xi32>
    %329 = arith.sitofp %328 : vector<16x1xi32> to vector<16x1xf32>
    %330 = arith.addf %326, %329 : vector<16x1xf32>
    %331 = arith.cmpf ogt, %307, %306 : vector<16x1xf32>
    %332 = arith.extui %331 : vector<16x1xi1> to vector<16x1xi32>
    %333 = arith.sitofp %332 : vector<16x1xi32> to vector<16x1xf32>
    %334 = arith.addf %330, %333 : vector<16x1xf32>
    %335 = arith.cmpf ogt, %308, %306 : vector<16x1xf32>
    %336 = arith.extui %335 : vector<16x1xi1> to vector<16x1xi32>
    %337 = arith.sitofp %336 : vector<16x1xi32> to vector<16x1xf32>
    %338 = arith.addf %334, %337 : vector<16x1xf32>
    %cst_79 = arith.constant 2.000000e+00 : f32
    %339 = vector.broadcast %cst_79 : f32 to vector<16x1xf32>
    %340 = arith.cmpf olt, %338, %339 : vector<16x1xf32>
    %341 = arith.extui %340 : vector<16x1xi1> to vector<16x1xi32>
    %342 = arith.sitofp %341 : vector<16x1xi32> to vector<16x1xf32>
    %cst_80 = arith.constant 0.000000e+00 : f32
    %343 = vector.broadcast %cst_80 : f32 to vector<16x1xf32>
    %344 = arith.cmpf ogt, %305, %307 : vector<16x1xf32>
    %345 = arith.extui %344 : vector<16x1xi1> to vector<16x1xi32>
    %346 = arith.sitofp %345 : vector<16x1xi32> to vector<16x1xf32>
    %347 = arith.addf %343, %346 : vector<16x1xf32>
    %348 = arith.cmpf ogt, %306, %307 : vector<16x1xf32>
    %349 = arith.extui %348 : vector<16x1xi1> to vector<16x1xi32>
    %350 = arith.sitofp %349 : vector<16x1xi32> to vector<16x1xf32>
    %351 = arith.addf %347, %350 : vector<16x1xf32>
    %352 = arith.cmpf ogt, %308, %307 : vector<16x1xf32>
    %353 = arith.extui %352 : vector<16x1xi1> to vector<16x1xi32>
    %354 = arith.sitofp %353 : vector<16x1xi32> to vector<16x1xf32>
    %355 = arith.addf %351, %354 : vector<16x1xf32>
    %cst_81 = arith.constant 2.000000e+00 : f32
    %356 = vector.broadcast %cst_81 : f32 to vector<16x1xf32>
    %357 = arith.cmpf olt, %355, %356 : vector<16x1xf32>
    %358 = arith.extui %357 : vector<16x1xi1> to vector<16x1xi32>
    %359 = arith.sitofp %358 : vector<16x1xi32> to vector<16x1xf32>
    %cst_82 = arith.constant 0.000000e+00 : f32
    %360 = vector.broadcast %cst_82 : f32 to vector<16x1xf32>
    %361 = arith.cmpf ogt, %305, %308 : vector<16x1xf32>
    %362 = arith.extui %361 : vector<16x1xi1> to vector<16x1xi32>
    %363 = arith.sitofp %362 : vector<16x1xi32> to vector<16x1xf32>
    %364 = arith.addf %360, %363 : vector<16x1xf32>
    %365 = arith.cmpf ogt, %306, %308 : vector<16x1xf32>
    %366 = arith.extui %365 : vector<16x1xi1> to vector<16x1xi32>
    %367 = arith.sitofp %366 : vector<16x1xi32> to vector<16x1xf32>
    %368 = arith.addf %364, %367 : vector<16x1xf32>
    %369 = arith.cmpf ogt, %307, %308 : vector<16x1xf32>
    %370 = arith.extui %369 : vector<16x1xi1> to vector<16x1xi32>
    %371 = arith.sitofp %370 : vector<16x1xi32> to vector<16x1xf32>
    %372 = arith.addf %368, %371 : vector<16x1xf32>
    %cst_83 = arith.constant 2.000000e+00 : f32
    %373 = vector.broadcast %cst_83 : f32 to vector<16x1xf32>
    %374 = arith.cmpf olt, %372, %373 : vector<16x1xf32>
    %375 = arith.extui %374 : vector<16x1xi1> to vector<16x1xi32>
    %376 = arith.sitofp %375 : vector<16x1xi32> to vector<16x1xf32>
    %cst_84 = arith.constant dense<0.000000e+00> : vector<16x64xf32>
    %377 = tpu.matmul %0, %4, %cst_84 {dimension_numbers = #tpu.dot_dimension_numbers<[1], [0], [0], [1], [0, 0, 1, 1], [], []>} : vector<16x32xf32>, vector<32x64xf32>, vector<16x64xf32> -> vector<16x64xf32>
    %cst_85 = arith.constant dense<0.000000e+00> : vector<16x64xf32>
    %378 = tpu.matmul %0, %5, %cst_85 {dimension_numbers = #tpu.dot_dimension_numbers<[1], [0], [0], [1], [0, 0, 1, 1], [], []>} : vector<16x32xf32>, vector<32x64xf32>, vector<16x64xf32> -> vector<16x64xf32>
    %379 = arith.negf %377 : vector<16x64xf32>
    %380 = math.exp %379 : vector<16x64xf32>
    %cst_86 = arith.constant 1.000000e+00 : f32
    %381 = vector.broadcast %cst_86 : f32 to vector<16x64xf32>
    %382 = arith.addf %381, %380 : vector<16x64xf32>
    %383 = arith.divf %381, %382 : vector<16x64xf32>
    %384 = arith.mulf %377, %383 : vector<16x64xf32>
    %385 = arith.mulf %384, %378 : vector<16x64xf32>
    %cst_87 = arith.constant 0.000000e+00 : f32
    %386 = vector.broadcast %cst_87 : f32 to vector<16x32xf32>
    %387 = vector.extract_strided_slice %385 {offsets = [0, 0], sizes = [16, 16], strides = [1, 1]} : vector<16x64xf32> to vector<16x16xf32>
    %c0_88 = arith.constant 0 : index
    %c0_89 = arith.constant 0 : index
    %388 = vector.load %arg7[%c0_88, %c0_89] : memref<64x32xf32, #tpu.memory_space<vmem>>, vector<16x32xf32>
    %cst_90 = arith.constant dense<0.000000e+00> : vector<16x32xf32>
    %389 = tpu.matmul %387, %388, %cst_90 {dimension_numbers = #tpu.dot_dimension_numbers<[1], [0], [0], [1], [0, 0, 1, 1], [], []>} : vector<16x16xf32>, vector<16x32xf32>, vector<16x32xf32> -> vector<16x32xf32>
    %390 = vector.broadcast %325 : vector<16x1xf32> to vector<16x32xf32>
    %391 = arith.mulf %389, %390 : vector<16x32xf32>
    %392 = arith.addf %386, %391 : vector<16x32xf32>
    %393 = vector.extract_strided_slice %385 {offsets = [0, 16], sizes = [16, 16], strides = [1, 1]} : vector<16x64xf32> to vector<16x16xf32>
    %c16_91 = arith.constant 16 : index
    %c0_92 = arith.constant 0 : index
    %394 = vector.load %arg7[%c16_91, %c0_92] : memref<64x32xf32, #tpu.memory_space<vmem>>, vector<16x32xf32>
    %cst_93 = arith.constant dense<0.000000e+00> : vector<16x32xf32>
    %395 = tpu.matmul %393, %394, %cst_93 {dimension_numbers = #tpu.dot_dimension_numbers<[1], [0], [0], [1], [0, 0, 1, 1], [], []>} : vector<16x16xf32>, vector<16x32xf32>, vector<16x32xf32> -> vector<16x32xf32>
    %396 = vector.broadcast %342 : vector<16x1xf32> to vector<16x32xf32>
    %397 = arith.mulf %395, %396 : vector<16x32xf32>
    %398 = arith.addf %392, %397 : vector<16x32xf32>
    %399 = vector.extract_strided_slice %385 {offsets = [0, 32], sizes = [16, 16], strides = [1, 1]} : vector<16x64xf32> to vector<16x16xf32>
    %c32_94 = arith.constant 32 : index
    %c0_95 = arith.constant 0 : index
    %400 = vector.load %arg7[%c32_94, %c0_95] : memref<64x32xf32, #tpu.memory_space<vmem>>, vector<16x32xf32>
    %cst_96 = arith.constant dense<0.000000e+00> : vector<16x32xf32>
    %401 = tpu.matmul %399, %400, %cst_96 {dimension_numbers = #tpu.dot_dimension_numbers<[1], [0], [0], [1], [0, 0, 1, 1], [], []>} : vector<16x16xf32>, vector<16x32xf32>, vector<16x32xf32> -> vector<16x32xf32>
    %402 = vector.broadcast %359 : vector<16x1xf32> to vector<16x32xf32>
    %403 = arith.mulf %401, %402 : vector<16x32xf32>
    %404 = arith.addf %398, %403 : vector<16x32xf32>
    %405 = vector.extract_strided_slice %385 {offsets = [0, 48], sizes = [16, 16], strides = [1, 1]} : vector<16x64xf32> to vector<16x16xf32>
    %c48_97 = arith.constant 48 : index
    %c0_98 = arith.constant 0 : index
    %406 = vector.load %arg7[%c48_97, %c0_98] : memref<64x32xf32, #tpu.memory_space<vmem>>, vector<16x32xf32>
    %cst_99 = arith.constant dense<0.000000e+00> : vector<16x32xf32>
    %407 = tpu.matmul %405, %406, %cst_99 {dimension_numbers = #tpu.dot_dimension_numbers<[1], [0], [0], [1], [0, 0, 1, 1], [], []>} : vector<16x16xf32>, vector<16x32xf32>, vector<16x32xf32> -> vector<16x32xf32>
    %408 = vector.broadcast %376 : vector<16x1xf32> to vector<16x32xf32>
    %409 = arith.mulf %407, %408 : vector<16x32xf32>
    %410 = arith.addf %404, %409 : vector<16x32xf32>
    %cst_100 = arith.constant 2.000000e+00 : f32
    %411 = vector.broadcast %cst_100 : f32 to vector<16x32xf32>
    %412 = arith.mulf %410, %411 : vector<16x32xf32>
    %c0_101 = arith.constant 0 : index
    %c0_102 = arith.constant 0 : index
    %413 = vector.load %arg11[%c0_101, %c0_102] : memref<16x32xf32, #tpu.memory_space<vmem>>, vector<16x32xf32>
    tpu.vector_store %arg11[%c0_101, %c0_102], %412 {strides = array<i32>} : memref<16x32xf32, #tpu.memory_space<vmem>>, vector<16x32xf32>,
    return
  }
  func.func @transform_0(%arg0: i32) -> (i32, i32) {
    %c0_i32 = arith.constant 0 : i32
    %c0_i32_0 = arith.constant 0 : i32
    %c0_i32_1 = arith.constant 0 : i32
    return %c0_i32, %c0_i32_0 : i32, i32
  }
  func.func @transform_1(%arg0: i32) -> (i32, i32) {
    %c0_i32 = arith.constant 0 : i32
    %c0_i32_0 = arith.constant 0 : i32
    %c0_i32_1 = arith.constant 0 : i32
    return %c0_i32, %c0_i32_0 : i32, i32
  }
  func.func @transform_2(%arg0: i32) -> (i32, i32) {
    %c0_i32 = arith.constant 0 : i32
    %c0_i32_0 = arith.constant 0 : i32
    %c0_i32_1 = arith.constant 0 : i32
    return %c0_i32, %c0_i32_0 : i32, i32
  }
  func.func @transform_3(%arg0: i32) -> (i32, i32) {
    %c0_i32 = arith.constant 0 : i32
    %c0_i32_0 = arith.constant 0 : i32
    %c0_i32_1 = arith.constant 0 : i32
    return %c0_i32, %c0_i32_0 : i32, i32
  }
  func.func @transform_4(%arg0: i32) -> (i32, i32) {
    %c0_i32 = arith.constant 0 : i32
    %c0_i32_0 = arith.constant 0 : i32
    %c0_i32_1 = arith.constant 0 : i32
    return %c0_i32, %c0_i32_0 : i32, i32
  }
  func.func @transform_5(%arg0: i32) -> (i32, i32) {
    %c0_i32 = arith.constant 0 : i32
    %c0_i32_0 = arith.constant 0 : i32
    %c0_i32_1 = arith.constant 0 : i32
    return %c0_i32, %c0_i32_0 : i32, i32
  }
  func.func @transform_6(%arg0: i32) -> (i32, i32) {
    %c0_i32 = arith.constant 0 : i32
    %c0_i32_0 = arith.constant 0 : i32
    %c0_i32_1 = arith.constant 0 : i32
    return %c0_i32, %c0_i32_0 : i32, i32
  }
  func.func @transform_7(%arg0: i32) -> (i32, i32) {
    %c0_i32 = arith.constant 0 : i32
    %c0_i32_0 = arith.constant 0 : i32
    %c0_i32_1 = arith.constant 0 : i32
    return %c0_i32, %c0_i32_0 : i32, i32
  }
  func.func @transform_8(%arg0: i32) -> (i32, i32) {
    %c0_i32 = arith.constant 0 : i32
    %c0_i32_0 = arith.constant 0 : i32
    %c0_i32_1 = arith.constant 0 : i32
    return %c0_i32, %c0_i32_0 : i32, i32
  }
  func.func @transform_9(%arg0: i32) -> (i32, i32) {
    %c0_i32 = arith.constant 0 : i32
    %c0_i32_0 = arith.constant 0 : i32
    %c0_i32_1 = arith.constant 0 : i32
    return %c0_i32, %c0_i32_0 : i32, i32
  }
  func.func @transform_10(%arg0: i32) -> (i32, i32) {
    %c0_i32 = arith.constant 0 : i32
    %c0_i32_0 = arith.constant 0 : i32
    %c0_i32_1 = arith.constant 0 : i32
    return %c0_i32, %c0_i32_0 : i32, i32
  }
  func.func @transform_11(%arg0: i32) -> (i32, i32) {
    %c0_i32 = arith.constant 0 : i32
    %c0_i32_0 = arith.constant 0 : i32
    %c0_i32_1 = arith.constant 0 : i32
    return %c0_i32, %c0_i32_0 : i32, i32
  }
  func.func @transform_12(%arg0: i32) -> (i32, i32) {
    %c0_i32 = arith.constant 0 : i32
    %c0_i32_0 = arith.constant 0 : i32
    %c0_i32_1 = arith.constant 0 : i32
    return %c0_i32, %c0_i32_0 : i32, i32
  }
  func.func @transform_13(%arg0: i32) -> (i32, i32) {
    %c0_i32 = arith.constant 0 : i32
    %c0_i32_0 = arith.constant 0 : i32
    %c0_i32_1 = arith.constant 0 : i32
    return %c0_i32, %c0_i32_0 : i32, i32
  }
}

</mosaic_0001>

<bundles_post_ra>
// kernel: llama_mlp_stu_forward.1
= control target key start
LH: loop header
LB: loop body
LE: loop exit
PB: predicated region body
PF: predicated region fallthrough
CT: control target
= control target key end

     0   :  { %19 = vsyncpa [#allocation3], 0  ;;  %s4329_s0 = inlined_call_operand.vmem [shape: f32[16,32], index: 0, kind: input, shape index: {}]   ;;  %s4330_s1 = inlined_call_operand.vmem [shape: f32[16,32], index: 1, kind: input, shape index: {}]   ;;  %s4331_s2 = inlined_call_operand.vmem [shape: f32[32,4], index: 2, kind: input, shape index: {}]   ;;  %s4332_s3 = inlined_call_operand.vmem [shape: f32[1,4], index: 3, kind: input, shape index: {}]   ;;  %s4333_s4 = inlined_call_operand.vmem [shape: f32[32,64], index: 4, kind: input, shape index: {}]   ;;  %s4334_s5 = inlined_call_operand.vmem [shape: f32[32,64], index: 5, kind: input, shape index: {}]   ;;  %s4335_s6 = inlined_call_operand.vmem [shape: f32[64,32], index: 6, kind: input, shape index: {}]   ;;  %s4336_s7 = inlined_call_operand.vmem [shape: f32[32,64], index: 7, kind: input, shape index: {}]   ;;  %s4337_s8 = inlined_call_operand.vmem [shape: f32[32,64], index: 8, kind: input, shape index: {}]   ;;  %s4338_s9 = inlined_call_operand.vmem [shape: f32[64,32], index: 9, kind: input, shape index: {}]   ;;  %s4339_s10 = inlined_call_operand.hbm [shape: f32[16,32], index: 10, kind: output, shape index: {0}]   ;;  %s4340_s11 = inlined_call_operand.hbm [shape: f32[16,32], index: 11, kind: output, shape index: {1}]   ;;  %s4341_s12 = inlined_call_operand.hbm [shape: f32[1,1], index: 12, kind: output, shape index: {2}]   ;;  %s4342_s13 = inlined_call_operand.hbm [shape: f32[1,1], index: 13, kind: output, shape index: {3}]  }
   0x1   :  { %20 = vsyncpa [#allocation5], 0  ;;  %v51_v0 = vld [vmem:[%s4333_s4] sm:$0xff]  ;;  %v52_v1 = vld [vmem:[%s4333_s4 + $0x8] sm:$0xff]  ;;  %vm65_vm0 = vcmask 261120  }
   0x2   :  { %v53_v2 = vld [vmem:[%s4333_s4 + $0x10] sm:$0xff]  ;;  %v3519_v3 = vpack.c.bf16 %v52_v1, %v51_v0  ;;  %v54_v4 = vld [vmem:[%s4333_s4 + $0x18] sm:$0xff]  ;;  %v3527_v5 = vld [vmem:[%s4330_s1] sm:$0xff] }
   0x3   :  { %v3529_v6 = vpack.c.bf16 %v54_v4, %v53_v2  ;;  %2818 = vmatprep.mubr.msk.f32.mxu1 %vm65_vm0, %v3527_v5  ;;  %v46_v7 = vld [vmem:[%s4331_s2] sm:$0xff]  ;;  %v47_v8 = vld [vmem:[%s4331_s2 + $0x8] sm:$0xff]  ;;  %v48_v9 = vld [vmem:[%s4331_s2 + $0x10] sm:$0xff]  ;;  %2807 = vmatprep.mubr.msk.f32.mxu0 %vm65_vm0, %v3527_v5 }
   0x4   :  { %2971 = vmatprep.subr.bf16.mxu1 %v3519_v3  ;;  %v3545_v10 = vpack.c.bf16 %v47_v8, %v46_v7  ;;  %v49_v11 = vld [vmem:[%s4331_s2 + $0x18] sm:$0xff]  ;;  %v55_v13 = vld [vmem:[%s4334_s5] sm:$0xff]  ;;  %v56_v14 = vld [vmem:[%s4334_s5 + $0x8] sm:$0xff] }
   0x5   :  { %2973 = vmatpush3.bf16.msra.mxu1 %v3519_v3  ;;  %v3551_v12 = vpack.c.bf16 %v49_v11, %v48_v9 }
   0x6   :  { %21 = vsyncpa [#allocation8], 0  ;;  %2975 = vmatprep.subr.bf16.mxu1 %v3529_v6  ;;  %2963 = vmatprep.subr.bf16.mxu0 %v3545_v10  ;;  %v3563_v15 = vpack.c.bf16 %v56_v14, %v55_v13  ;;  %v3569_v16 = vld [vmem:[%s4330_s1 + $0x8] sm:$0xff]  ;;  %v57_v17 = vld [vmem:[%s4334_s5 + $0x10] sm:$0xff]  ;;  %vm777_vm1 = vcmask 130048   ;;  %s3422_s16 = smov 112  }
   0x7   :  { %2965 = vmatpush3.bf16.msra.mxu0 %v3545_v10  ;;  %v58_v18 = vld [vmem:[%s4334_s5 + $0x18] sm:$0xff]  ;;  %v775_v20 = vld [vmem:[%s4335_s6] sm:$0xff]  ;;  %v776_v21 = vld [vmem:[%s4335_s6 + $0x8] sm:$0xff]  ;;  %s3423_s1 = smov 96   ;;  %s3424_s18 = smov 80   ;;  %vm1296_vm2 = vcmask 523264  }
   0x8   :  { %2967 = vmatprep.subr.bf16.mxu0 %v3551_v12  ;;  %v3581_v19 = vpack.c.bf16 %v58_v18, %v57_v17  ;;  %v3598_v22 = vpack.c.bf16 %v776_v21, %v775_v20  ;;  %v944_v23 = vld [vmem:[%s4335_s6 + $0x20] sm:$0xff]  ;;  %v945_v24 = vld [vmem:[%s4335_s6 + $0x28] sm:$0xff]  ;;  %v859_v38 = vld [vmem:[%s4335_s6 + $0x10] sm:$0xff]  ;;  %s3425_s19 = smov 127   ;;  %s3426_s20 = smov 126  }
   0x9   :  { %2977 = vmatpush3.bf16.msra.mxu1 %v3529_v6  ;;  %v2994_v25 = vpack.c.bf16 %v945_v24, %v944_v23  ;;  %v860_v39 = vld [vmem:[%s4335_s6 + $0x18] sm:$0xff]  ;;  %v1114_v41 = vld [vmem:[%s4336_s7] sm:$0xff]  ;;  %v1115_v42 = vld [vmem:[%s4336_s7 + $0x8] sm:$0xff]  ;;  %s3427_s21 = smov 125   ;;  %s3429_s14 = smov 2  }
   0xa   :  { %2987 = vmatprep.subr.bf16.mxu1 %v3598_v22  ;;  %v2990_v40 = vpack.c.bf16 %v860_v39, %v859_v38  ;;  %v3002_v43 = vpack.c.bf16 %v1115_v42, %v1114_v41  ;;  %v1029_v50 = vld [vmem:[%s4335_s6 + $0x30] sm:$0xff]  ;;  %v1030_v51 = vld [vmem:[%s4335_s6 + $0x38] sm:$0xff]  ;;  %v2584_v53 = vld [vmem:[%s4332_s3] ss:$0 sm:$0xff]  ;;  %s3430_s15 = smov 3  }
   0xb   :  { %2969 = vmatpush3.bf16.msra.mxu0 %v3551_v12  ;;  %v2998_v52 = vpack.c.bf16 %v1030_v51, %v1029_v50  ;;  %v1116_v58 = vld [vmem:[%s4336_s7 + $0x10] sm:$0xff]  ;;  %v1117_v59 = vld [vmem:[%s4336_s7 + $0x18] sm:$0xff]  ;;  %v1193_v60 = vld [vmem:[%s4337_s8] sm:$0xff] }
   0xc   :  { %2819 = vmatmul.mubr.msk.f32.vlgmr.msra.gmra.mrb[0].mxu1 %vm65_vm0, %v3569_v16  ;;  %2979 = vmatprep.subr.bf16.mxu0 %v3563_v15  ;;  %v1194_v61 = vld [vmem:[%s4337_s8 + $0x8] sm:$0xff]  ;;  %v3006_v62 = vpack.c.bf16 %v1117_v59, %v1116_v58  ;;  %v1195_v2 = vld [vmem:[%s4337_s8 + $0x10] sm:$0xff]  ;;  %v1196_v4 = vld [vmem:[%s4337_s8 + $0x18] sm:$0xff]  ;;  %s3428_s8 = smov 1  }
   0xd   :  { %2989 = vmatpush3.bf16.msra.mxu1 %v3598_v22  ;;  %v3010_v1 = vpack.c.bf16 %v1194_v61, %v1193_v60  ;;  %v3014_v9 = vpack.c.bf16 %v1196_v4, %v1195_v2 }
   0xe   :  { %2808 = vmatmul.mubr.msk.f32.vlgmr.msra.gmra.mrb[0].mxu0 %vm65_vm0, %v3569_v16  ;;  %2991 = vmatprep.subr.bf16.mxu1 %v2990_v40 }
   0xf   :  { %2981 = vmatpush3.bf16.msra.mxu0 %v3563_v15  ;;  %2829 = vmatprep.mubr.msk.f32.mxu0 %vm65_vm0, %v3527_v5 }
  0x10   :  { %2983 = vmatprep.subr.bf16.mxu0 %v3581_v19 }
  0x13   :  { %2985 = vmatpush3.bf16.msra.mxu0 %v3581_v19 }
  0x14   :  { %2995 = vmatprep.subr.bf16.mxu0 %v2994_v25 }
  0x16   :  { %2830 = vmatmul.mubr.msk.f32.vlgmr.msra.gmra.mrb[2].mxu0 %vm65_vm0, %v3569_v16 }
  0x17   :  { %2997 = vmatpush3.bf16.msra.mxu0 %v2994_v25 }
  0x18   :  { %3003 = vmatprep.subr.bf16.mxu0 %v3002_v43 }
  0xdf   :  { %v2820_v26 = vpop.f32.mrb[0].mxu1 }
  0xe0   :  { %v2624_v27 = vmul.f32 -1.442695, %v2820_v26  ;;  %v675_v28 = vpop.f32.mrb[1].mxu1 }
  0xe1   :  { %v2623_v29 = vmul.f32 -1.442695, %v675_v28  ;;  %v2809_v30 = vpop.f32.mrb[0].mxu0 }
  0xe2   :  { %3199 = vpow2.f32 %v2624_v27  ;;  %v138_v31 = vpop.f32.mrb[1].mxu0  ;;  %v3637_v54 = vadd.f32 %v2809_v30, %v2584_v53  ;;  %v1289_v27 = vld [vmem:[%s4338_s9 + $0x8] sm:$0xff]  ;;  %v1291_v30 = vld [vmem:[%s4338_s9 + $0x18] sm:$0xff] }
  0xe3   :  { %3201 = vpow2.f32 %v2623_v29  ;;  %v3639_v55 = vadd.f32 %v2584_v53, %v138_v31  ;;  %v1290_v29 = vld [vmem:[%s4338_s9 + $0x10] sm:$0xff] }
  0xe4   :  { %v3022_v31 = vpack.c.bf16 %v1291_v30, %v1290_v29 }
  0xe9   :  { %v2831_v32 = vpop.f32.mrb[2].mxu0 }
  0xea   :  { %v750_v33 = vpop.f32.mrb[3].mxu0 }
  0xec   :  { %v3200_v34 = vpop.eup %3199 }
  0xed   :  { %v3202_v35 = vpop.eup %3201  ;;  %v766_v36 = vadd.f32 1.0, %v3200_v34 }
  0xee   :  { %v765_v37 = vadd.f32 1.0, %v3202_v35  ;;  %v1294_v35 = vld [vmem:[%s4338_s9 + $0x30] sm:$0xff] }
  0xef   :  { %3203 = vrcp.f32 %v766_v36  ;;  %v1295_v36 = vld [vmem:[%s4338_s9 + $0x38] sm:$0xff] }
  0xf0   :  { %3205 = vrcp.f32 %v765_v37  ;;  %v3030_v37 = vpack.c.bf16 %v1295_v36, %v1294_v35 }
  0xf9   :  { %v3204_v44 = vpop.eup %3203 }
  0xfa   :  { %v3206_v45 = vpop.eup %3205  ;;  %v772_v46 = vmul.f32 %v3204_v44, %v2820_v26 }
  0xfb   :  { %v771_v47 = vmul.f32 %v3206_v45, %v675_v28 }
  0xfc   :  { %v774_v48 = vmul.f32 %v2831_v32, %v772_v46  ;;  %v1292_v32 = vld [vmem:[%s4338_s9 + $0x20] sm:$0xff] }
  0xfd   :  { %v773_v49 = vmul.f32 %v771_v47, %v750_v33  ;;  %v1293_v33 = vld [vmem:[%s4338_s9 + $0x28] sm:$0xff] }
  0xfe   :  { %v3026_v34 = vpack.c.bf16 %v1293_v33, %v1292_v32 }
  0xff   :  { %861 = vrot.lane.b32.xlu1 %v773_v49, %s3422_s16  ;;  %946 = vrot.lane.b32.xlu0 %v773_v49, %s3423_s1 }
 0x100   :  { %2836 = vmatprep.mubr.msk.f32.mxu1 %vm777_vm1, %v773_v49 }
 0x101   :  { %2837 = vmatmul.mubr.msk.f32.vlgmr.msra.gmra.mrb[2].mxu1 %vm777_vm1, %v774_v48 }
 0x102   :  { %2993 = vmatpush3.bf16.msra.mxu1 %v2990_v40 }
 0x103   :  { %863 = vrot.lane.b32.xlu1 %v774_v48, %s3422_s16  ;;  %948 = vrot.lane.b32.xlu0 %v774_v48, %s3423_s1 }
 0x104   :  { %2999 = vmatprep.subr.bf16.mxu1 %v2998_v52 }
 0x107   :  { %1033 = vrot.lane.b32.xlu1 %v774_v48, %s3424_s18  ;;  %1031 = vrot.lane.b32.xlu0 %v773_v49, %s3424_s18 }
 0x10b   :  { %151 = vrot.lane.b32.xlu1 %v3637_v54, %s3425_s19  ;;  %149 = vrot.lane.b32.xlu0 %v3639_v55, %s3425_s19 }
 0x10f   :  { %159 = vrot.lane.b32.xlu1 %v3637_v54, %s3426_s20  ;;  %157 = vrot.lane.b32.xlu0 %v3639_v55, %s3426_s20 }
 0x113   :  { %167 = vrot.lane.b32.xlu1 %v3637_v54, %s3427_s21  ;;  %165 = vrot.lane.b32.xlu0 %v3639_v55, %s3427_s21 }
 0x171   :  { %v862_v56 = vpop.permute.xlu1 %861  ;;  %v947_v57 = vpop.permute.xlu0 %946 }
 0x172   :  { %2843 = vmatprep.mubr.msk.f32.mxu1 %vm777_vm1, %v862_v56  ;;  %2850 = vmatprep.mubr.msk.f32.mxu0 %vm777_vm1, %v947_v57 }
 0x175   :  { %v864_v63 = vpop.permute.xlu1 %863  ;;  %v949_v0 = vpop.permute.xlu0 %948 }
 0x176   :  { %2844 = vmatmul.mubr.msk.f32.vlgmr.msra.gmra.mrb[4].mxu1 %vm777_vm1, %v864_v63  ;;  %2851 = vmatmul.mubr.msk.f32.vlgmr.msra.gmra.mrb[4].mxu0 %vm777_vm1, %v949_v0  ;;  %v42_v0 = vld [vmem:[%s4329_s0] sm:$0xff] }
 0x177   :  { %3005 = vmatpush3.bf16.msra.mxu0 %v3002_v43  ;;  %3001 = vmatpush3.bf16.msra.mxu1 %v2998_v52 }
 0x178   :  { %3007 = vmatprep.subr.bf16.mxu0 %v3006_v62  ;;  %2868 = vmatprep.mubr.msk.f32.mxu0 %vm65_vm0, %v3527_v5 }
 0x179   :  { %v1034_v7 = vpop.permute.xlu1 %1033  ;;  %v1032_v8 = vpop.permute.xlu0 %1031  ;;  %3011 = vmatprep.subr.bf16.mxu1 %v3010_v1 }
 0x17a   :  { %2857 = vmatprep.mubr.msk.f32.mxu1 %vm777_vm1, %v1032_v8 }
 0x17b   :  { %3009 = vmatpush3.bf16.msra.mxu0 %v3006_v62  ;;  %2858 = vmatmul.mubr.msk.f32.vlgmr.msra.gmra.mrb[6].mxu1 %vm777_vm1, %v1034_v7 }
 0x17c   :  { %3013 = vmatpush3.bf16.msra.mxu1 %v3010_v1  ;;  %2879 = vmatprep.mubr.msk.f32.mxu1 %vm65_vm0, %v3527_v5  ;;  %v43_v1 = vld [vmem:[%s4329_s0 + $0x8] sm:$0xff] }
 0x17d   :  { %v152_v11 = vpop.permute.xlu1 %151  ;;  %v150_v13 = vpop.permute.xlu0 %149  ;;  %3015 = vmatprep.subr.bf16.mxu1 %v3014_v9 }
 0x17e   :  { %2869 = vmatmul.mubr.msk.f32.vlgmr.msra.gmra.mrb[6].mxu0 %vm65_vm0, %v3569_v16  ;;  %v156_v18 = vmax.f32 %v3637_v54, %v152_v11  ;;  %v155_v20 = vmax.f32 %v3639_v55, %v150_v13 }
 0x180   :  { %3017 = vmatpush3.bf16.msra.mxu1 %v3014_v9 }
 0x181   :  { %v160_v14 = vpop.permute.xlu1 %159  ;;  %v158_v17 = vpop.permute.xlu0 %157  ;;  %3035 = vmatprep.subr.bf16.mxu1 %v3545_v10 }
 0x182   :  { %v164_v21 = vmax.f32 %v156_v18, %v160_v14  ;;  %v163_v5 = vmax.f32 %v155_v20, %v158_v17 }
 0x183   :  { %2880 = vmatmul.mubr.msk.f32.vlgmr.msra.gmra.mrb[8].mxu1 %vm65_vm0, %v3569_v16 }
 0x184   :  { %3037 = vmatpush3.bf16.msra.mxu1 %v3545_v10  ;;  %2909 = vmatprep.mubr.msk.f32.mxu1 %vm65_vm0, %v42_v0 }
 0x185   :  { %v168_v23 = vpop.permute.xlu1 %167  ;;  %v166_v24 = vpop.permute.xlu0 %165  ;;  %3039 = vmatprep.subr.bf16.mxu1 %v3551_v12 }
 0x186   :  { %v3690_v25 = vmax.f32 %v164_v21, %v168_v23  ;;  %v3692_v26 = vmax.f32 %v163_v5, %v166_v24 }
 0x188   :  { %183 = vrot.lane.b32.xlu1 %v3690_v25, %s3428_s8  ;;  %181 = vrot.lane.b32.xlu0 %v3692_v26, %s3428_s8  ;;  %v173_v30 = vsub.f32 %v3639_v55, %v3692_v26 }
 0x189   :  { %3041 = vmatpush3.bf16.msra.mxu1 %v3551_v12  ;;  %v1288_v12 = vld [vmem:[%s4338_s9] sm:$0xff] }
 0x18a   :  { %3043 = vmatprep.subr.bf16.mxu1 %v3519_v3  ;;  %v3018_v28 = vpack.c.bf16 %v1289_v27, %v1288_v12  ;;  %v175_v33 = vmul.f32 1.442695, %v173_v30 }
 0x18c   :  { %195 = vrot.lane.b32.xlu1 %v3690_v25, %s3429_s14  ;;  %193 = vrot.lane.b32.xlu0 %v3692_v26, %s3429_s14 }
 0x18d   :  { %3019 = vmatprep.subr.bf16.mxu0 %v3018_v28  ;;  %2910 = vmatmul.mubr.msk.f32.vlgmr.msra.gmra.mrb[10].mxu1 %vm65_vm0, %v43_v1 }
 0x18e   :  { %3021 = vmatpush3.bf16.msra.mxu0 %v3018_v28  ;;  %3045 = vmatpush3.bf16.msra.mxu1 %v3519_v3  ;;  %v174_v28 = vsub.f32 %v3637_v54, %v3690_v25 }
 0x18f   :  { %3023 = vmatprep.subr.bf16.mxu0 %v3022_v31  ;;  %2920 = vmatprep.mubr.msk.f32.mxu1 %vm65_vm0, %v42_v0 }
 0x190   :  { %207 = vrot.lane.b32.xlu1 %v3690_v25, %s3430_s15  ;;  %205 = vrot.lane.b32.xlu0 %v3692_v26, %s3430_s15  ;;  %v177_v32 = vmul.f32 1.442695, %v174_v28 }
 0x191   :  { %3047 = vmatprep.subr.bf16.mxu1 %v3529_v6 }
 0x192   :  { %3025 = vmatpush3.bf16.msra.mxu0 %v3022_v31  ;;  %3049 = vmatpush3.bf16.msra.mxu1 %v3529_v6 }
 0x193   :  { %3027 = vmatprep.subr.bf16.mxu0 %v3026_v34  ;;  %3059 = vmatprep.subr.bf16.mxu1 %v3598_v22 }
 0x195   :  { %2921 = vmatmul.mubr.msk.f32.vlgmr.msra.gmra.mrb[12].mxu1 %vm65_vm0, %v43_v1 }
 0x196   :  { %3029 = vmatpush3.bf16.msra.mxu0 %v3026_v34  ;;  %3061 = vmatpush3.bf16.msra.mxu1 %v3598_v22 }
 0x197   :  { %3031 = vmatprep.subr.bf16.mxu0 %v3030_v37 }
 0x19a   :  { %3033 = vmatpush3.bf16.msra.mxu0 %v3030_v37 }
 0x19b   :  { %3051 = vmatprep.subr.bf16.mxu0 %v3563_v15 }
 0x1d4   :  { %v3708_v10 = vpop.f32.mrb[2].mxu1 }
 0x1d5   :  { %v3710_v16 = vpop.f32.mrb[3].mxu1 }
 0x1fa   :  { %v184_v38 = vpop.permute.xlu1 %183  ;;  %v182_v39 = vpop.permute.xlu0 %181 }
 0x1fb   :  { %v188_v40 = vsub.f32 %v3637_v54, %v184_v38  ;;  %v187_v41 = vsub.f32 %v3639_v55, %v182_v39 }
 0x1fd   :  { %v191_v42 = vmul.f32 1.442695, %v188_v40  ;;  %v189_v43 = vmul.f32 1.442695, %v187_v41 }
 0x1fe   :  { %v196_v44 = vpop.permute.xlu1 %195  ;;  %v194_v45 = vpop.permute.xlu0 %193 }
 0x1ff   :  { %3207 = vpow2.f32 %v191_v42  ;;  %v200_v46 = vsub.f32 %v3637_v54, %v196_v44  ;;  %v199_v47 = vsub.f32 %v3639_v55, %v194_v45 }
 0x200   :  { %3209 = vpow2.f32 %v189_v43 }
 0x201   :  { %v203_v48 = vmul.f32 1.442695, %v200_v46  ;;  %v201_v49 = vmul.f32 1.442695, %v199_v47 }
 0x202   :  { %v208_v50 = vpop.permute.xlu1 %207  ;;  %v206_v51 = vpop.permute.xlu0 %205 }
 0x203   :  { %3211 = vpow2.f32 %v203_v48  ;;  %v212_v52 = vsub.f32 %v3637_v54, %v208_v50  ;;  %v211_v53 = vsub.f32 %v3639_v55, %v206_v51 }
 0x204   :  { %3213 = vpow2.f32 %v201_v49 }
 0x205   :  { %v215_v56 = vmul.f32 1.442695, %v212_v52  ;;  %v213_v57 = vmul.f32 1.442695, %v211_v53 }
 0x207   :  { %3215 = vpow2.f32 %v215_v56 }
 0x208   :  { %3217 = vpow2.f32 %v213_v57 }
 0x209   :  { %v3743_v58 = vpop.eup %3207 }
 0x20a   :  { %v3745_v59 = vpop.eup %3209  ;;  %221 = vrot.lane.b32.xlu1 %v3743_v58, %s3425_s19 }
 0x20b   :  { %219 = vrot.lane.b32.xlu0 %v3745_v59, %s3425_s19 }
 0x20d   :  { %v3751_v60 = vpop.eup %3211 }
 0x20e   :  { %v3753_v61 = vpop.eup %3213  ;;  %231 = vrot.lane.b32.xlu1 %v3751_v60, %s3426_s20 }
 0x20f   :  { %229 = vrot.lane.b32.xlu0 %v3753_v61, %s3426_s20 }
 0x211   :  { %v3759_v62 = vpop.eup %3215 }
 0x212   :  { %v3761_v63 = vpop.eup %3217  ;;  %241 = vrot.lane.b32.xlu1 %v3759_v62, %s3427_s21 }
 0x213   :  { %239 = vrot.lane.b32.xlu0 %v3761_v63, %s3427_s21 }
 0x249   :  { %v3782_v2 = vpop.f32.mrb[4].mxu1  ;;  %v3784_v4 = vpop.f32.mrb[4].mxu0 }
 0x24a   :  { %v3786_v7 = vpop.f32.mrb[5].mxu1  ;;  %v3788_v8 = vpop.f32.mrb[5].mxu0 }
 0x24e   :  { %v3790_v3 = vpop.f32.mrb[6].mxu1 }
 0x24f   :  { %v3792_v9 = vpop.f32.mrb[7].mxu1 }
 0x251   :  { %v2870_v11 = vpop.f32.mrb[6].mxu0 }
 0x252   :  { %v2638_v6 = vmul.f32 -1.442695, %v2870_v11  ;;  %v1184_v13 = vpop.f32.mrb[7].mxu0 }
 0x253   :  { %v2637_v14 = vmul.f32 -1.442695, %v1184_v13 }
 0x254   :  { %3219 = vpow2.f32 %v2638_v6 }
 0x255   :  { %3221 = vpow2.f32 %v2637_v14 }
 0x256   :  { %v2881_v17 = vpop.f32.mrb[8].mxu1 }
 0x257   :  { %v1263_v22 = vpop.f32.mrb[9].mxu1 }
 0x25e   :  { %v3220_v18 = vpop.eup %3219 }
 0x25f   :  { %v3222_v20 = vpop.eup %3221  ;;  %v1279_v21 = vadd.f32 1.0, %v3220_v18 }
 0x260   :  { %v1278_v5 = vadd.f32 1.0, %v3222_v20  ;;  %v3821_v46 = vpop.f32.mrb[10].mxu1 }
 0x261   :  { %3223 = vrcp.f32 %v1279_v21  ;;  %v3823_v47 = vpop.f32.mrb[11].mxu1 }
 0x262   :  { %3225 = vrcp.f32 %v1278_v5 }
 0x263   :  { %3227 = vpow2.f32 %v177_v32 }
 0x264   :  { %3229 = vpow2.f32 %v175_v33 }
 0x268   :  { %v2922_v48 = vpop.f32.mrb[12].mxu1 }
 0x269   :  { %v2027_v49 = vpop.f32.mrb[13].mxu1 }
 0x26b   :  { %v3224_v23 = vpop.eup %3223 }
 0x26c   :  { %v3226_v24 = vpop.eup %3225  ;;  %v1285_v12 = vmul.f32 %v3224_v23, %v2870_v11  ;;  %v2699_v11 = vmul.f32 -1.442695, %v2027_v49 }
 0x26d   :  { %v1284_v27 = vmul.f32 %v3226_v24, %v1184_v13  ;;  %v3228_v55 = vpop.eup %3227 }
 0x26e   :  { %v1287_v29 = vmul.f32 %v2881_v17, %v1285_v12  ;;  %v3230_v34 = vpop.eup %3229 }
 0x26f   :  { %v1286_v31 = vmul.f32 %v1284_v27, %v1263_v22 }
 0x271   :  { %2898 = vmatprep.mubr.msk.f32.mxu0 %vm1296_vm2, %v1286_v31 }
 0x272   :  { %2899 = vmatmul.mubr.msk.f32.vlgmr.msra.gmra.mrb[8].mxu0 %vm1296_vm2, %v1287_v29 }
 0x273   :  { %3053 = vmatpush3.bf16.msra.mxu0 %v3563_v15  ;;  %2931 = vmatprep.mubr.msk.f32.mxu0 %vm65_vm0, %v42_v0 }
 0x274   :  { %3055 = vmatprep.subr.bf16.mxu0 %v3581_v19 }
 0x277   :  { %3057 = vmatpush3.bf16.msra.mxu0 %v3581_v19 }
 0x27a   :  { %2932 = vmatmul.mubr.msk.f32.vlgmr.msra.gmra.mrb[10].mxu0 %vm65_vm0, %v43_v1 }
 0x27c   :  { %v222_v54 = vpop.permute.xlu1 %221 }
 0x27d   :  { %v220_v25 = vpop.permute.xlu0 %219  ;;  %v226_v35 = vadd.f32 %v3228_v55, %v222_v54 }
 0x27e   :  { %v225_v37 = vadd.f32 %v3230_v34, %v220_v25 }
 0x280   :  { %v232_v26 = vpop.permute.xlu1 %231 }
 0x281   :  { %v230_v36 = vpop.permute.xlu0 %229  ;;  %v236_v38 = vadd.f32 %v232_v26, %v226_v35 }
 0x282   :  { %v235_v15 = vadd.f32 %v230_v36, %v225_v37 }
 0x284   :  { %v242_v39 = vpop.permute.xlu1 %241 }
 0x285   :  { %v246_v40 = vadd.f32 %v242_v39, %v236_v38  ;;  %v240_v41 = vpop.permute.xlu0 %239 }
 0x286   :  { %v245_v42 = vadd.f32 %v240_v41, %v235_v15 }
 0x287   :  { %3231 = vrcp.f32 %v246_v40 }
 0x288   :  { %3233 = vrcp.f32 %v245_v42 }
 0x291   :  { %v3232_v43 = vpop.eup %3231 }
 0x292   :  { %v3234_v19 = vpop.eup %3233  ;;  %257 = vrot.lane.b32.xlu1 %v3232_v43, %s3428_s8  ;;  %v3809_v44 = vmul.f32 %v3232_v43, %v3228_v55 }
 0x293   :  { %255 = vrot.lane.b32.xlu0 %v3234_v19, %s3428_s8  ;;  %v3815_v45 = vmul.f32 %v3234_v19, %v3230_v34 }
 0x296   :  { %265 = vrot.lane.b32.xlu1 %v3232_v43, %s3429_s14 }
 0x297   :  { %263 = vrot.lane.b32.xlu0 %v3234_v19, %s3429_s14 }
 0x29a   :  { %273 = vrot.lane.b32.xlu1 %v3232_v43, %s3430_s15 }
 0x29b   :  { %271 = vrot.lane.b32.xlu0 %v3234_v19, %s3430_s15 }
 0x29e   :  { %319 = vrot.lane.b32.xlu1 %v3809_v44, %s3430_s15 }
 0x29f   :  { %297 = vrot.lane.b32.xlu0 %v3809_v44, %s3429_s14 }
 0x2a2   :  { %295 = vrot.lane.b32.xlu1 %v3815_v45, %s3429_s14 }
 0x2a3   :  { %317 = vrot.lane.b32.xlu0 %v3815_v45, %s3430_s15 }
 0x304   :  { %v258_v50 = vpop.permute.xlu1 %257 }
 0x305   :  { %v3826_v51 = vmul.f32 %v3743_v58, %v258_v50  ;;  %v256_v0 = vpop.permute.xlu0 %255 }
 0x306   :  { %v3845_v58 = vmul.f32 %v3745_v59, %v256_v0 }
 0x307   :  { %363 = vrot.lane.b32.xlu1 %v3826_v51, %s3428_s8 }
 0x308   :  { %v266_v52 = vpop.permute.xlu1 %265 }
 0x309   :  { %v3831_v53 = vmul.f32 %v3751_v60, %v266_v52  ;;  %v264_v60 = vpop.permute.xlu0 %263 }
 0x30b   :  { %415 = vrot.lane.b32.xlu0 %v3831_v53, %s3426_s20  ;;  %385 = vrot.lane.b32.xlu1 %v3826_v51, %s3429_s14 }
 0x30c   :  { %v274_v56 = vpop.permute.xlu1 %273 }
 0x30d   :  { %v3838_v57 = vmul.f32 %v3759_v62, %v274_v56  ;;  %v3856_v62 = vmul.f32 %v3753_v61, %v264_v60  ;;  %v272_v59 = vpop.permute.xlu0 %271  ;;  %v2700_v61 = vmul.f32 -1.442695, %v2922_v48  ;;  %v3431_v60 = vmov 0.0  }
 0x30e   :  { %v3867_v1 = vmul.f32 %v3761_v63, %v272_v59 }
 0x30f   :  { %481 = vrot.lane.b32.xlu0 %v3838_v57, %s3427_s21  ;;  %429 = vrot.lane.b32.xlu1 %v3831_v53, %s3425_s19  ;;  %3235 = vpow2.f32 %v2700_v61 }
 0x310   :  { %3237 = vpow2.f32 %v2699_v11  ;;  %v3905_v41 = vpop.permute.xlu1 %319 }
 0x311   :  { %v3907_v42 = vpop.permute.xlu0 %297 }
 0x312   :  { %vm302_vm2 = vcmp.gt.f32.partialorder %v3831_v53, %v3907_v42 }
 0x313   :  { %361 = vrot.lane.b32.xlu0 %v3845_v58, %s3428_s8  ;;  %451 = vrot.lane.b32.xlu1 %v3831_v53, %s3428_s8 }
 0x314   :  { %v296_v43 = vpop.permute.xlu1 %295 }
 0x315   :  { %v3909_v19 = vpop.permute.xlu0 %317  ;;  %vm301_vm15 = vcmp.gt.f32.partialorder %v3856_v62, %v296_v43 }
 0x317   :  { %383 = vrot.lane.b32.xlu0 %v3845_v58, %s3429_s14  ;;  %495 = vrot.lane.b32.xlu1 %v3838_v57, %s3426_s20 }
 0x319   :  { %v3236_v63 = vpop.eup %3235 }
 0x31a   :  { %v3238_v6 = vpop.eup %3237  ;;  %v2118_v13 = vadd.f32 1.0, %v3236_v63 }
 0x31b   :  { %427 = vrot.lane.b32.xlu0 %v3856_v62, %s3425_s19  ;;  %517 = vrot.lane.b32.xlu1 %v3838_v57, %s3425_s19  ;;  %v2117_v14 = vadd.f32 1.0, %v3238_v6 }
 0x31c   :  { %3239 = vrcp.f32 %v2118_v13 }
 0x31d   :  { %3241 = vrcp.f32 %v2117_v14 }
 0x31f   :  { %449 = vrot.lane.b32.xlu0 %v3856_v62, %s3428_s8  ;;  %349 = vrot.lane.b32.xlu1 %v3826_v51, %s3425_s19 }
 0x323   :  { %493 = vrot.lane.b32.xlu0 %v3867_v1, %s3426_s20  ;;  %347 = vrot.lane.b32.xlu1 %v3845_v58, %s3425_s19 }
 0x326   :  { %v3240_v20 = vpop.eup %3239 }
 0x327   :  { %515 = vrot.lane.b32.xlu0 %v3867_v1, %s3425_s19  ;;  %413 = vrot.lane.b32.xlu1 %v3856_v62, %s3426_s20  ;;  %v3242_v5 = vpop.eup %3241  ;;  %v2124_v54 = vmul.f32 %v3240_v20, %v2922_v48 }
 0x328   :  { %v2123_v25 = vmul.f32 %v3242_v5, %v2027_v49 }
 0x32b   :  { %479 = vrot.lane.b32.xlu1 %v3867_v1, %s3427_s21 }
 0x345   :  { %v2900_v17 = vpop.f32.mrb[8].mxu0 }
 0x346   :  { %1379 = vst.msk [vmem:[#allocation4 + $0x8] sm:$0xff] %vm65_vm0, %v2900_v17  ;;  %v1381_v22 = vmul.f32 0.5, %v2900_v17  ;;  %v1369_v18 = vpop.f32.mrb[9].mxu0 }
 0x347   :  { %1378 = vst.msk [vmem:[#allocation4] sm:$0xff] %vm65_vm0, %v1369_v18  ;;  %v1380_v21 = vmul.f32 0.5, %v1369_v18 }
 0x348   :  { %v1396_v23 = vsub.f32 %v3782_v2, %v1381_v22  ;;  %v1383_v24 = vsub.f32 %v3708_v10, %v1381_v22  ;;  %v1408_v12 = vsub.f32 %v3784_v4, %v1381_v22  ;;  %v1420_v27 = vsub.f32 %v3790_v3, %v1381_v22 }
 0x349   :  { %v1407_v28 = vsub.f32 %v3788_v8, %v1380_v21  ;;  %v1419_v29 = vsub.f32 %v3792_v9, %v1380_v21  ;;  %v1382_v30 = vsub.f32 %v3710_v16, %v1380_v21  ;;  %v1395_v31 = vsub.f32 %v3786_v7, %v1380_v21 }
 0x34a   :  { %v1398_v32 = vmul.f32 %v1396_v23, %v1396_v23  ;;  %v1385_v33 = vmul.f32 %v1383_v24, %v1383_v24  ;;  %v1410_v55 = vmul.f32 %v1408_v12, %v1408_v12  ;;  %v1422_v7 = vmul.f32 %v1420_v27, %v1420_v27 }
 0x34b   :  { %v1409_v3 = vmul.f32 %v1407_v28, %v1407_v28  ;;  %v1421_v35 = vmul.f32 %v1419_v29, %v1419_v29  ;;  %v1384_v37 = vmul.f32 %v1382_v30, %v1382_v30  ;;  %v1397_v39 = vmul.f32 %v1395_v31, %v1395_v31 }
 0x34c   :  { %v1402_v2 = vsel %vm65_vm0, %v1398_v32, 0.0  ;;  %v1389_v4 = vsel %vm65_vm0, %v1385_v33, 0.0  ;;  %v1414_v16 = vsel %vm65_vm0, %v1410_v55, 0.0  ;;  %v1426_v36 = vsel %vm65_vm0, %v1422_v7, 0.0  ;;  %v2323_v7 = vld [vmem:[%s4335_s6 + $0x20] sm:$0xff] }
 0x34d   :  { %1403 = vadd.xlane.f32.xlu0 %v1402_v2  ;;  %v2933_v10 = vpop.f32.mrb[10].mxu0  ;;  %v1411_v34 = vsel %vm65_vm0, %v1409_v3, 0.0  ;;  %v1423_v38 = vsel %vm65_vm0, %v1421_v35, 0.0  ;;  %v1386_v15 = vsel %vm65_vm0, %v1384_v37, 0.0  ;;  %v1399_v40 = vsel %vm65_vm0, %v1397_v39, 0.0  ;;  %v2324_v35 = vld [vmem:[%s4335_s6 + $0x28] sm:$0xff] }
 0x34e   :  { %v3891_v26 = vmul.f32 %v2933_v10, %v2124_v54  ;;  %v2102_v8 = vpop.f32.mrb[11].mxu0  ;;  %v2589_v55 = vsel %vm301_vm15, 1.0, %v3431_v60  ;;  %v2590_v10 = vsel %vm302_vm2, 1.0, %v3431_v60  ;;  %v2423_v37 = vld [vmem:[%s4335_s6 + $0x38] sm:$0xff] }
 0x34f   :  { %1390 = vadd.xlane.f32.xlu1 %v1389_v4  ;;  %v3893_v9 = vmul.f32 %v2123_v25, %v2102_v8  ;;  %v3126_v4 = vpack.i.bf16 %v2590_v10, %v2589_v55 }
 0x351   :  { %1415 = vadd.xlane.f32.xlu0 %v1414_v16  ;;  %2938 = vmatprep.mubr.msk.f32.mxu1 %vm777_vm1, %v3893_v9  ;;  %v2225_v16 = vld [vmem:[%s4335_s6 + $0x18] sm:$0xff] }
 0x352   :  { %2939 = vmatmul.mubr.msk.f32.vlgmr.msra.gmra.mrb[14].mxu1 %vm777_vm1, %v3891_v26 }
 0x353   :  { %1412 = vadd.xlane.f32.xlu1 %v1411_v34 }
 0x355   :  { %1427 = vadd.xlane.f32.xlu0 %v1426_v36  ;;  %v2422_v36 = vld [vmem:[%s4335_s6 + $0x30] sm:$0xff] }
 0x357   :  { %1424 = vadd.xlane.f32.xlu1 %v1423_v38  ;;  %v3066_v38 = vpack.c.bf16 %v2324_v35, %v2323_v7 }
 0x359   :  { %1387 = vadd.xlane.f32.xlu0 %v1386_v15  ;;  %v3992_v15 = vpack.c.bf16 %v2423_v37, %v2422_v36  ;;  %3067 = vmatprep.subr.bf16.mxu0 %v3066_v38 }
 0x35a   :  { %3069 = vmatpush3.bf16.msra.mxu0 %v3066_v38 }
 0x35d   :  { %1400 = vadd.xlane.f32.xlu0 %v1399_v40 }
 0x379   :  { %v364_v48 = vpop.permute.xlu1 %363 }
 0x37a   :  { %vm368_vm3 = vcmp.gt.f32.partialorder %v3831_v53, %v364_v48 }
 0x37b   :  { %v2598_v59 = vsel %vm368_vm3, 1.0, %v3431_v60  ;;  %vm323_vm3 = vcmp.gt.f32.partialorder %v3867_v1, %v3909_v19 }
 0x37c   :  { %v2591_v3 = vsel %vm323_vm3, 1.0, %v3431_v60 }
 0x37d   :  { %v3911_v49 = vpop.permute.xlu0 %415  ;;  %v386_v50 = vpop.permute.xlu1 %385 }
 0x37e   :  { %vm390_vm5 = vcmp.gt.f32.partialorder %v3838_v57, %v386_v50 }
 0x37f   :  { %v2600_v13 = vsel %vm390_vm5, 1.0, %v3431_v60 }
 0x381   :  { %v3913_v52 = vpop.permute.xlu0 %481  ;;  %v430_v56 = vpop.permute.xlu1 %429 }
 0x382   :  { %vm434_vm7 = vcmp.gt.f32.partialorder %v3826_v51, %v430_v56 }
 0x383   :  { %v2606_v18 = vsel %vm434_vm7, 1.0, %v3431_v60 }
 0x385   :  { %v362_v0 = vpop.permute.xlu0 %361  ;;  %v452_v63 = vpop.permute.xlu1 %451 }
 0x386   :  { %vm367_vm4 = vcmp.gt.f32.partialorder %v3856_v62, %v362_v0  ;;  %vm456_vm9 = vcmp.gt.f32.partialorder %v3838_v57, %v452_v63 }
 0x387   :  { %v2597_v61 = vsel %vm367_vm4, 1.0, %v3431_v60  ;;  %v2608_v24 = vsel %vm456_vm9, 1.0, %v3431_v60  ;;  %vm324_vm4 = vcmp.gt.f32.partialorder %v3838_v57, %v3905_v41 }
 0x388   :  { %v3096_v11 = vpack.i.bf16 %v2598_v59, %v2597_v61  ;;  %v2592_v8 = vsel %vm324_vm4, 1.0, %v3431_v60 }
 0x389   :  { %v384_v6 = vpop.permute.xlu0 %383  ;;  %v496_v20 = vpop.permute.xlu1 %495 }
 0x38a   :  { %vm389_vm6 = vcmp.gt.f32.partialorder %v3867_v1, %v384_v6  ;;  %3097 = vrot.lane.b32.xlu0 %v3096_v11, %s3426_s20  ;;  %vm500_vm11 = vcmp.gt.f32.partialorder %v3826_v51, %v496_v20 }
 0x38b   :  { %v2599_v14 = vsel %vm389_vm6, 1.0, %v3431_v60  ;;  %v2614_v30 = vsel %vm500_vm11, 1.0, %v3431_v60 }
 0x38c   :  { %v3101_v17 = vpack.i.bf16 %v2600_v13, %v2599_v14 }
 0x38d   :  { %v428_v22 = vpop.permute.xlu0 %427  ;;  %v518_v28 = vpop.permute.xlu1 %517 }
 0x38e   :  { %vm433_vm8 = vcmp.gt.f32.partialorder %v3845_v58, %v428_v22  ;;  %3102 = vrot.lane.b32.xlu1 %v3101_v17, %s3427_s21  ;;  %vm522_vm13 = vcmp.gt.f32.partialorder %v3831_v53, %v518_v28 }
 0x38f   :  { %v2605_v21 = vsel %vm433_vm8, 1.0, %v3431_v60  ;;  %v2616_v54 = vsel %vm522_vm13, 1.0, %v3431_v60 }
 0x390   :  { %v3106_v5 = vpack.i.bf16 %v2606_v18, %v2605_v21 }
 0x391   :  { %v450_v23 = vpop.permute.xlu0 %449  ;;  %v3994_v39 = vpop.permute.xlu1 %349 }
 0x392   :  { %vm455_vm10 = vcmp.gt.f32.partialorder %v3867_v1, %v450_v23  ;;  %3107 = vrot.lane.b32.xlu0 %v3106_v5, %s3425_s19 }
 0x393   :  { %v2607_v12 = vsel %vm455_vm10, 1.0, %v3431_v60 }
 0x394   :  { %v3111_v27 = vpack.i.bf16 %v2608_v24, %v2607_v12 }
 0x395   :  { %v494_v29 = vpop.permute.xlu0 %493  ;;  %v3997_v40 = vpop.permute.xlu1 %347 }
 0x396   :  { %vm499_vm12 = vcmp.gt.f32.partialorder %v3845_v58, %v494_v29  ;;  %3112 = vrot.lane.b32.xlu1 %v3111_v27, %s3427_s21 }
 0x397   :  { %v2613_v31 = vsel %vm499_vm12, 1.0, %v3431_v60 }
 0x398   :  { %v3116_v32 = vpack.i.bf16 %v2614_v30, %v2613_v31 }
 0x399   :  { %v516_v33 = vpop.permute.xlu0 %515  ;;  %v3999_v41 = vpop.permute.xlu1 %413 }
 0x39a   :  { %vm521_vm14 = vcmp.gt.f32.partialorder %v3856_v62, %v516_v33  ;;  %3117 = vrot.lane.b32.xlu0 %v3116_v32, %s3425_s19 }
 0x39b   :  { %v2615_v25 = vsel %vm521_vm14, 1.0, %v3431_v60 }
 0x39c   :  { %v3121_v2 = vpack.i.bf16 %v2616_v54, %v2615_v25 }
 0x39d   :  { %v4001_v42 = vpop.permute.xlu1 %479 }
 0x39e   :  { %3122 = vrot.lane.b32.xlu1 %v3121_v2, %s3426_s20  ;;  %2226 = vrot.lane.b32.xlu0 %v3893_v9, %s3422_s16 }
 0x3a2   :  { %2228 = vrot.lane.b32.xlu1 %v3891_v26, %s3422_s16  ;;  %2325 = vrot.lane.b32.xlu0 %v3893_v9, %s3423_s1 }
 0x3a6   :  { %2327 = vrot.lane.b32.xlu1 %v3891_v26, %s3423_s1  ;;  %2424 = vrot.lane.b32.xlu0 %v3893_v9, %s3424_s18  ;;  %v3131_v9 = vpack.i.bf16 %v2592_v8, %v2591_v3 }
 0x3aa   :  { %2426 = vrot.lane.b32.xlu1 %v3891_v26, %s3424_s18  ;;  %281 = vrot.lane.b32.xlu0 %v3815_v45, %s3428_s8  ;;  %v2224_v26 = vld [vmem:[%s4335_s6 + $0x10] sm:$0xff] }
 0x3ab   :  { %v3062_v34 = vpack.c.bf16 %v2225_v16, %v2224_v26 }
 0x3ad   :  { %3063 = vmatprep.subr.bf16.mxu1 %v3062_v34 }
 0x3ae   :  { %283 = vrot.lane.b32.xlu1 %v3809_v44, %s3428_s8  ;;  %3127 = vrot.lane.b32.xlu0 %v3126_v4, %s3425_s19 }
 0x3af   :  { %3065 = vmatpush3.bf16.msra.mxu1 %v3062_v34 }
 0x3b0   :  { %3071 = vmatprep.subr.bf16.mxu1 %v3992_v15 }
 0x3b2   :  { %3132 = vrot.lane.b32.xlu1 %v3131_v9, %s3426_s20 }
 0x3da   :  { %v1404_v43 = vpop.xlane.xlu0 %1403 }
 0x3db   :  { %v1406_v50 = vmul.f32 0.03125, %v1404_v43 }
 0x3dc   :  { %v1391_v19 = vpop.xlane.xlu1 %1390 }
 0x3dd   :  { %v1394_v48 = vmul.f32 0.03125, %v1391_v19  ;;  %v1434_v63 = vsub.f32 0.0, %v1406_v50 }
 0x3de   :  { %v1416_v56 = vpop.xlane.xlu0 %1415 }
 0x3df   :  { %v1418_v0 = vmul.f32 0.03125, %v1416_v56  ;;  %v1432_v59 = vsub.f32 0.0, %v1394_v48 }
 0x3e0   :  { %v1413_v61 = vpop.xlane.xlu1 %1412 }
 0x3e1   :  { %v1436_v11 = vsub.f32 0.0, %v1418_v0  ;;  %vm1440_vm5 = vcmp.gt.f32.partialorder %v1434_v63, %v1432_v59  ;;  %vm1470_vm9 = vcmp.gt.f32.partialorder %v1432_v59, %v1434_v63  ;;  %v1417_v28 = vmul.f32 0.03125, %v1413_v61 }
 0x3e2   :  { %v1428_v6 = vpop.xlane.xlu0 %1427  ;;  %v2642_v22 = vsel %vm1440_vm5, 1.0, %v3431_v60  ;;  %v2650_v12 = vsel %vm1470_vm9, 1.0, %v3431_v60  ;;  %vm354_vm5 = vcmp.gt.f32.partialorder %v3809_v44, %v3994_v39 }
 0x3e3   :  { %vm1448_vm6 = vcmp.gt.f32.partialorder %v1436_v11, %v1432_v59  ;;  %vm1500_vm7 = vcmp.gt.f32.partialorder %v1432_v59, %v1436_v11  ;;  %vm1508_vm8 = vcmp.gt.f32.partialorder %v1434_v63, %v1436_v11  ;;  %vm1478_vm10 = vcmp.gt.f32.partialorder %v1436_v11, %v1434_v63 }
 0x3e4   :  { %v1425_v13 = vpop.xlane.xlu1 %1424  ;;  %v1430_v14 = vmul.f32 0.03125, %v1428_v6  ;;  %v2644_v18 = vsel %vm1448_vm6, 1.0, %v3431_v60  ;;  %v2658_v21 = vsel %vm1500_vm7, 1.0, %v3431_v60  ;;  %v2660_v5 = vsel %vm1508_vm8, 1.0, %v3431_v60 }
 0x3e5   :  { %v1429_v20 = vmul.f32 0.03125, %v1425_v13  ;;  %v2652_v27 = vsel %vm1478_vm10, 1.0, %v3431_v60  ;;  %v1454_v29 = vadd.f32 %v2644_v18, %v2642_v22  ;;  %v1514_v30 = vadd.f32 %v2660_v5, %v2658_v21 }
 0x3e6   :  { %v1388_v17 = vpop.xlane.xlu0 %1387  ;;  %v1438_v23 = vsub.f32 0.0, %v1430_v14  ;;  %v1435_v2 = vsub.f32 0.0, %v1417_v28  ;;  %v1484_v26 = vadd.f32 %v2652_v27, %v2650_v12  ;;  %v2596_v28 = vsel %vm354_vm5, 1.0, %v3431_v60 }
 0x3e7   :  { %v1393_v24 = vmul.f32 0.03125, %v1388_v17  ;;  %v1437_v33 = vsub.f32 0.0, %v1429_v20 }
 0x3e8   :  { %vm1456_vm11 = vcmp.gt.f32.partialorder %v1438_v23, %v1432_v59  ;;  %vm1516_vm12 = vcmp.gt.f32.partialorder %v1438_v23, %v1436_v11  ;;  %vm1530_vm13 = vcmp.gt.f32.partialorder %v1432_v59, %v1438_v23  ;;  %vm1486_vm14 = vcmp.gt.f32.partialorder %v1438_v23, %v1434_v63 }
 0x3e9   :  { %v2646_v31 = vsel %vm1456_vm11, 1.0, %v3431_v60  ;;  %v2662_v32 = vsel %vm1516_vm12, 1.0, %v3431_v60  ;;  %v2666_v54 = vsel %vm1530_vm13, 1.0, %v3431_v60  ;;  %vm1538_vm15 = vcmp.gt.f32.partialorder %v1434_v63, %v1438_v23 }
 0x3ea   :  { %v1431_v25 = vsub.f32 0.0, %v1393_v24  ;;  %v1462_v55 = vadd.f32 %v2646_v31, %v1454_v29  ;;  %v2668_v10 = vsel %vm1538_vm15, 1.0, %v3431_v60  ;;  %vm1546_vm2 = vcmp.gt.f32.partialorder %v1436_v11, %v1438_v23  ;;  %v1401_v3 = vpop.xlane.xlu0 %1400 }
 0x3eb   :  { %v1522_v4 = vadd.f32 %v2662_v32, %v1514_v30  ;;  %v2654_v8 = vsel %vm1486_vm14, 1.0, %v3431_v60  ;;  %v1544_v9 = vadd.f32 %v2668_v10, %v2666_v54  ;;  %vm1515_vm3 = vcmp.gt.f32.partialorder %v1437_v33, %v1435_v2 }
 0x3ec   :  { %v2670_v16 = vsel %vm1546_vm2, 1.0, %v3431_v60  ;;  %vm1447_vm4 = vcmp.gt.f32.partialorder %v1435_v2, %v1431_v25  ;;  %vm1464_vm6 = vcmp.lt.f32.partialorder %v1462_v55, 2.0  ;;  %vm1455_vm7 = vcmp.gt.f32.partialorder %v1437_v33, %v1431_v25 }
 0x3ed   :  { %vm1499_vm8 = vcmp.gt.f32.partialorder %v1431_v25, %v1435_v2  ;;  %v1405_v7 = vmul.f32 0.03125, %v1401_v3  ;;  %vm1524_vm9 = vcmp.lt.f32.partialorder %v1522_v4, 2.0  ;;  %v2661_v34 = vsel %vm1515_vm3, 1.0, %v3431_v60 }
 0x3ee   :  { %vm1545_vm10 = vcmp.gt.f32.partialorder %v1435_v2, %v1437_v33  ;;  %v1492_v35 = vadd.f32 %v2654_v8, %v1484_v26  ;;  %vm353_vm11 = vcmp.gt.f32.partialorder %v3815_v45, %v3997_v40  ;;  %v1552_v36 = vadd.f32 %v2670_v16, %v1544_v9 }
 0x3ef   :  { %v2643_v37 = vsel %vm1447_vm4, 1.0, %v3431_v60  ;;  %vm1529_vm12 = vcmp.gt.f32.partialorder %v1431_v25, %v1437_v33  ;;  %v1433_v38 = vsub.f32 0.0, %v1405_v7  ;;  %v2645_v43 = vsel %vm1455_vm7, 1.0, %v3431_v60 }
 0x3f0   :  { %v2657_v19 = vsel %vm1499_vm8, 1.0, %v3431_v60  ;;  %v2648_v48 = vsel %vm1464_vm6, 1.0, %v3431_v60  ;;  %vm1494_vm13 = vcmp.lt.f32.partialorder %v1492_v35, 2.0  ;;  %v2665_v50 = vsel %vm1529_vm12, 1.0, %v3431_v60 }
 0x3f1   :  { %vm1439_vm14 = vcmp.gt.f32.partialorder %v1433_v38, %v1431_v25  ;;  %vm1469_vm15 = vcmp.gt.f32.partialorder %v1431_v25, %v1433_v38  ;;  %vm1477_vm2 = vcmp.gt.f32.partialorder %v1435_v2, %v1433_v38  ;;  %vm1485_vm3 = vcmp.gt.f32.partialorder %v1437_v33, %v1433_v38 }
 0x3f2   :  { %v2641_v56 = vsel %vm1439_vm14, 1.0, %v3431_v60  ;;  %v2649_v0 = vsel %vm1469_vm15, 1.0, %v3431_v60  ;;  %v2651_v59 = vsel %vm1477_vm2, 1.0, %v3431_v60  ;;  %vm1507_vm4 = vcmp.gt.f32.partialorder %v1433_v38, %v1435_v2 }
 0x3f3   :  { %v1453_v61 = vadd.f32 %v2643_v37, %v2641_v56  ;;  %v1483_v11 = vadd.f32 %v2651_v59, %v2649_v0  ;;  %vm1537_vm7 = vcmp.gt.f32.partialorder %v1433_v38, %v1437_v33  ;;  %v2653_v63 = vsel %vm1485_vm3, 1.0, %v3431_v60 }
 0x3f4   :  { %v2659_v6 = vsel %vm1507_vm4, 1.0, %v3431_v60  ;;  %v2667_v13 = vsel %vm1537_vm7, 1.0, %v3431_v60  ;;  %v2656_v14 = vsel %vm1494_vm13, 1.0, %v3431_v60  ;;  %v2664_v21 = vsel %vm1524_vm9, 1.0, %v3431_v60 }
 0x3f5   :  { %v1513_v17 = vadd.f32 %v2659_v6, %v2657_v19  ;;  %v1543_v22 = vadd.f32 %v2667_v13, %v2665_v50  ;;  %v1560_v18 = vmax.f32 %v2648_v48, %v2656_v14  ;;  %v1461_v20 = vadd.f32 %v2645_v43, %v1453_v61 }
 0x3f6   :  { %vm1554_vm6 = vcmp.lt.f32.partialorder %v1552_v36, 2.0  ;;  %v2669_v5 = vsel %vm1545_vm10, 1.0, %v3431_v60  ;;  %v1491_v23 = vadd.f32 %v2653_v63, %v1483_v11  ;;  %vm420_vm12 = vcmp.gt.f32.partialorder %v3809_v44, %v3911_v49 }
 0x3f7   :  { %v1521_v24 = vadd.f32 %v2661_v34, %v1513_v17  ;;  %v1551_v12 = vadd.f32 %v2669_v5, %v1543_v22  ;;  %v1562_v27 = vmax.f32 %v1560_v18, %v2664_v21  ;;  %vm1463_vm8 = vcmp.lt.f32.partialorder %v1461_v20, 2.0 }
 0x3f8   :  { %v2647_v30 = vsel %vm1463_vm8, 1.0, %v3431_v60  ;;  %vm1493_vm9 = vcmp.lt.f32.partialorder %v1491_v23, 2.0  ;;  %v2672_v31 = vsel %vm1554_vm6, 1.0, %v3431_v60  ;;  %v2595_v32 = vsel %vm353_vm11, 1.0, %v3431_v60 }
 0x3f9   :  { %vm1523_vm10 = vcmp.lt.f32.partialorder %v1521_v24, 2.0  ;;  %vm419_vm13 = vcmp.gt.f32.partialorder %v3815_v45, %v3999_v41  ;;  %v1564_v33 = vmax.f32 %v1562_v27, %v2672_v31  ;;  %v2655_v54 = vsel %vm1493_vm9, 1.0, %v3431_v60 }
 0x3fa   :  { %vm1553_vm14 = vcmp.lt.f32.partialorder %v1551_v12, 2.0  ;;  %v2663_v2 = vsel %vm1523_vm10, 1.0, %v3431_v60  ;;  %v1559_v55 = vmax.f32 %v2647_v30, %v2655_v54  ;;  %v2604_v36 = vsel %vm420_vm12, 1.0, %v3431_v60 }
 0x3fb   :  { %v1566_v4 = vsub.f32 %v2648_v48, %v1564_v33  ;;  %v1572_v3 = vsub.f32 %v2656_v14, %v1564_v33  ;;  %v1578_v8 = vsub.f32 %v2664_v21, %v1564_v33  ;;  %v1584_v9 = vsub.f32 %v2672_v31, %v1564_v33 }
 0x3fc   :  { %v3098_v29 = vpop.permute.xlu0 %3097  ;;  %v1561_v16 = vmax.f32 %v1559_v55, %v2663_v2  ;;  %v2671_v7 = vsel %vm1553_vm14, 1.0, %v3431_v60  ;;  %v2603_v19 = vsel %vm419_vm13, 1.0, %v3431_v60  ;;  %vm486_vm15 = vcmp.gt.f32.partialorder %v3809_v44, %v3913_v52 }
 0x3fd   :  { %v3296_v25 = vadd.low.f32.bf16 %v2595_v32, %v3098_v29  ;;  %v3297_v26 = vadd.high.f32.bf16 %v2596_v28, %v3098_v29  ;;  %v1569_v34 = vmul.f32 1.442695, %v1566_v4  ;;  %v1575_v35 = vmul.f32 1.442695, %v1572_v3 }
 0x3fe   :  { %v1563_v43 = vmax.f32 %v1561_v16, %v2671_v7  ;;  %v1581_v50 = vmul.f32 1.442695, %v1578_v8  ;;  %v1587_v56 = vmul.f32 1.442695, %v1584_v9  ;;  %vm485_vm2 = vcmp.gt.f32.partialorder %v3815_v45, %v4001_v42 }
 0x3ff   :  { %3243 = vpow2.f32 %v1569_v34  ;;  %v2612_v29 = vsel %vm486_vm15, 1.0, %v3431_v60  ;;  %v2611_v33 = vsel %vm485_vm2, 1.0, %v3431_v60 }
 0x400   :  { %v3103_v10 = vpop.permute.xlu1 %3102  ;;  %3245 = vpow2.f32 %v1575_v35  ;;  %v1565_v61 = vsub.f32 %v2647_v30, %v1563_v43  ;;  %v1571_v22 = vsub.f32 %v2655_v54, %v1563_v43  ;;  %v1577_v18 = vsub.f32 %v2663_v2, %v1563_v43 }
 0x401   :  { %v3298_v37 = vadd.high.f32.bf16 %v3297_v26, %v3103_v10  ;;  %v3299_v38 = vadd.low.f32.bf16 %v3296_v25, %v3103_v10  ;;  %3247 = vpow2.f32 %v1581_v50  ;;  %v1583_v20 = vsub.f32 %v2671_v7, %v1563_v43 }
 0x402   :  { %v1567_v17 = vmul.f32 1.442695, %v1565_v61  ;;  %3249 = vpow2.f32 %v1587_v56  ;;  %v1573_v21 = vmul.f32 1.442695, %v1571_v22  ;;  %v1579_v5 = vmul.f32 1.442695, %v1577_v18 }
 0x403   :  { %vm406_vm5 = vcmp.lt.f32.partialorder %v3298_v37, 2.0  ;;  %vm405_vm11 = vcmp.lt.f32.partialorder %v3299_v38, 2.0 }
 0x404   :  { %v3108_v48 = vpop.permute.xlu0 %3107  ;;  %v2602_v0 = vsel %vm406_vm5, 1.0, %v3431_v60  ;;  %v2601_v59 = vsel %vm405_vm11, 1.0, %v3431_v60  ;;  %3251 = vpow2.f32 %v1567_v17 }
 0x405   :  { %v3300_v11 = vadd.high.f32.bf16 %v2604_v36, %v3108_v48  ;;  %v3301_v63 = vadd.low.f32.bf16 %v2603_v19, %v3108_v48  ;;  %v546_v6 = vmul.f32 %v2602_v0, %v3994_v39  ;;  %v545_v13 = vmul.f32 %v2601_v59, %v3997_v40 }
 0x406   :  { %3253 = vpow2.f32 %v1573_v21  ;;  %v1585_v40 = vmul.f32 1.442695, %v1583_v20 }
 0x407   :  { %551 = vrot.lane.b32.xlu1 %v546_v6, %s3428_s8  ;;  %549 = vrot.lane.b32.xlu0 %v545_v13, %s3428_s8  ;;  %3255 = vpow2.f32 %v1579_v5 }
 0x408   :  { %v3113_v14 = vpop.permute.xlu1 %3112  ;;  %3257 = vpow2.f32 %v1585_v40 }
 0x409   :  { %v3302_v23 = vadd.high.f32.bf16 %v3300_v11, %v3113_v14  ;;  %v3303_v24 = vadd.low.f32.bf16 %v3301_v63, %v3113_v14  ;;  %v4072_v12 = vpop.eup %3243 }
 0x40a   :  { %v3246_v32 = vpop.eup %3245 }
 0x40b   :  { %vm472_vm3 = vcmp.lt.f32.partialorder %v3302_v23, 2.0  ;;  %vm471_vm4 = vcmp.lt.f32.partialorder %v3303_v24, 2.0  ;;  %v1590_v10 = vadd.f32 %v3246_v32, %v4072_v12  ;;  %v3248_v4 = vpop.eup %3247 }
 0x40c   :  { %v3118_v39 = vpop.permute.xlu0 %3117  ;;  %v2610_v27 = vsel %vm472_vm3, 1.0, %v3431_v60  ;;  %v2609_v28 = vsel %vm471_vm4, 1.0, %v3431_v60 }
 0x40d   :  { %v558_v30 = vmul.f32 %v2610_v27, %v3911_v49  ;;  %v557_v31 = vmul.f32 %v2609_v28, %v3999_v41  ;;  %v3304_v54 = vadd.high.f32.bf16 %v2612_v29, %v3118_v39  ;;  %v3305_v55 = vadd.low.f32.bf16 %v2611_v33, %v3118_v39  ;;  %v3250_v49 = vpop.eup %3249 }
 0x40e   :  { %v1592_v8 = vadd.f32 %v3248_v4, %v1590_v10  ;;  %v3252_v9 = vpop.eup %3251 }
 0x40f   :  { %563 = vrot.lane.b32.xlu1 %v558_v30, %s3428_s8  ;;  %561 = vrot.lane.b32.xlu0 %v557_v31, %s3428_s8 }
 0x410   :  { %v3123_v25 = vpop.permute.xlu1 %3122  ;;  %v2227_v2 = vpop.permute.xlu0 %2226  ;;  %v1594_v7 = vadd.f32 %v3250_v49, %v1592_v8 }
 0x411   :  { %2945 = vmatprep.mubr.msk.f32.mxu1 %vm777_vm1, %v2227_v2  ;;  %v3306_v3 = vadd.high.f32.bf16 %v3304_v54, %v3123_v25  ;;  %v3307_v41 = vadd.low.f32.bf16 %v3305_v55, %v3123_v25  ;;  %v3254_v34 = vpop.eup %3253 }
 0x412   :  { %3259 = vrcp.f32 %v1594_v7  ;;  %v1589_v43 = vadd.f32 %v3254_v34, %v3252_v9  ;;  %v3256_v19 = vpop.eup %3255 }
 0x413   :  { %vm538_vm7 = vcmp.lt.f32.partialorder %v3306_v3, 2.0  ;;  %vm537_vm6 = vcmp.lt.f32.partialorder %v3307_v41, 2.0  ;;  %v3258_v0 = vpop.eup %3257 }
 0x414   :  { %v2229_v26 = vpop.permute.xlu1 %2228  ;;  %v2326_v16 = vpop.permute.xlu0 %2325  ;;  %v2618_v35 = vsel %vm538_vm7, 1.0, %v3431_v60  ;;  %v2617_v36 = vsel %vm537_vm6, 1.0, %v3431_v60  ;;  %v1591_v56 = vadd.f32 %v3256_v19, %v1589_v43  ;;  %vm589_vm6 = vcmask 7168  }
 0x415   :  { %2946 = vmatmul.mubr.msk.f32.vlgmr.msra.gmra.mrb[16].mxu1 %vm777_vm1, %v2229_v26  ;;  %2952 = vmatprep.mubr.msk.f32.mxu0 %vm777_vm1, %v2326_v16  ;;  %v570_v37 = vmul.f32 %v2618_v35, %v3913_v52  ;;  %v569_v38 = vmul.f32 %v2617_v36, %v4001_v42  ;;  %v3295_v52 = vld [vmem:[%s4332_s3] ss:$0 sm:$0xff]  ;;  %s3434_s3 = smov [#allocation4]  }
 0x416   :  { %3073 = vmatpush3.bf16.msra.mxu1 %v3992_v15  ;;  %v4099_v15 = vadd.f32 %v3295_v52, %v3821_v46  ;;  %v4102_v42 = vadd.f32 %v3295_v52, %v3823_v47  ;;  %v1593_v59 = vadd.f32 %v3258_v0, %v1591_v56 }
 0x417   :  { %575 = vrot.lane.b32.xlu1 %v570_v37, %s3428_s8  ;;  %573 = vrot.lane.b32.xlu0 %v569_v38, %s3428_s8 }
 0x418   :  { %v2328_v48 = vpop.permute.xlu1 %2327  ;;  %v2425_v50 = vpop.permute.xlu0 %2424  ;;  %3261 = vrcp.f32 %v1593_v59 }
 0x419   :  { %2959 = vmatprep.mubr.msk.f32.mxu1 %vm777_vm1, %v2425_v50  ;;  %2953 = vmatmul.mubr.msk.f32.vlgmr.msra.gmra.mrb[12].mxu0 %vm777_vm1, %v2328_v48  ;;  %3263 = vlog2.f32 %v3826_v51 }
 0x41a   :  { %3265 = vlog2.f32 %v3845_v58 }
 0x41b   :  { %1785 = vrot.lane.b32.xlu1 %v4099_v15, %s3428_s8  ;;  %1783 = vrot.lane.b32.xlu0 %v4102_v42, %s3428_s8  ;;  %3267 = vlog2.f32 %v3831_v53 }
 0x41c   :  { %v2427_v61 = vpop.permute.xlu1 %2426  ;;  %v3260_v11 = vpop.eup %3259 }
 0x41d   :  { %2960 = vmatmul.mubr.msk.f32.vlgmr.msra.gmra.mrb[18].mxu1 %vm777_vm1, %v2427_v61  ;;  %v1602_v46 = vmul.f32 %v3260_v11, %v3246_v32  ;;  %v1604_v47 = vmul.f32 %v3260_v11, %v3248_v4  ;;  %v1606_v63 = vmul.f32 %v3260_v11, %v3250_v49  ;;  %v4117_v6 = vmul.f32 %v3260_v11, %v4072_v12  ;;  %v282_v43 = vpop.permute.xlu0 %281 }
 0x41e   :  { %vm287_vm12 = vcmp.gt.f32.partialorder %v3845_v58, %v282_v43 }
 0x41f   :  { %1799 = vrot.lane.b32.xlu1 %v4099_v15, %s3429_s14  ;;  %1797 = vrot.lane.b32.xlu0 %v4102_v42, %s3429_s14  ;;  %3269 = vlog2.f32 %v1602_v46 }
 0x420   :  { %3271 = vlog2.f32 %v1604_v47 }
 0x421   :  { %3273 = vlog2.f32 %v1606_v63  ;;  %v3128_v48 = vpop.permute.xlu0 %3127 }
 0x422   :  { %v3262_v13 = vpop.eup %3261  ;;  %3275 = vlog2.f32 %v3838_v57 }
 0x423   :  { %1821 = vrot.lane.b32.xlu1 %v4099_v15, %s3430_s15  ;;  %1819 = vrot.lane.b32.xlu0 %v4102_v42, %s3430_s15  ;;  %v1601_v14 = vmul.f32 %v3262_v13, %v3254_v34  ;;  %v1603_v17 = vmul.f32 %v3262_v13, %v3256_v19  ;;  %v1605_v22 = vmul.f32 %v3262_v13, %v3258_v0  ;;  %3277 = vlog2.f32 %v3856_v62  ;;  %v3264_v53 = vpop.eup %3263  ;;  %v284_v19 = vpop.permute.xlu1 %283 }
 0x424   :  { %v4124_v18 = vmul.f32 %v3262_v13, %v3252_v9  ;;  %v3266_v20 = vpop.eup %3265  ;;  %v1626_v24 = vmul.f32 0.6931472, %v3264_v53  ;;  %vm288_vm1 = vcmp.gt.f32.partialorder %v3826_v51, %v284_v19 }
 0x425   :  { %3279 = vlog2.f32 %v1601_v14  ;;  %v3268_v21 = vpop.eup %3267  ;;  %v1624_v25 = vmul.f32 0.6931472, %v3266_v20  ;;  %v4138_v16 = vpop.f32.mrb[14].mxu1  ;;  %v2588_v56 = vsel %vm288_vm1, 1.0, %v3431_v60 }
 0x426   :  { %3281 = vlog2.f32 %v1603_v17  ;;  %v1648_v27 = vmul.f32 0.6931472, %v3268_v21  ;;  %v4140_v7 = vpop.f32.mrb[15].mxu1  ;;  %v3308_v0 = vadd.high.f32.bf16 %v2588_v56, %v3128_v48 }
 0x427   :  { %1849 = vrot.lane.b32.xlu1 %v4099_v15, %s3425_s19  ;;  %1847 = vrot.lane.b32.xlu0 %v4102_v42, %s3425_s19  ;;  %3283 = vlog2.f32 %v1605_v22  ;;  %v3133_v50 = vpop.permute.xlu1 %3132 }
 0x428   :  { %3285 = vlog2.f32 %v3867_v1  ;;  %v3309_v52 = vadd.high.f32.bf16 %v3308_v0, %v3133_v50 }
 0x429   :  { %v3270_v57 = vpop.eup %3269  ;;  %3287 = vlog2.f32 %v4117_v6 }
 0x42a   :  { %v3272_v5 = vpop.eup %3271  ;;  %v1622_v23 = vmul.f32 0.6931472, %v3270_v57  ;;  %vm340_vm8 = vcmp.lt.f32.partialorder %v3309_v52, 2.0  ;;  %3289 = vlog2.f32 %v3809_v44 }
 0x42b   :  { %1887 = vrot.lane.b32.xlu1 %v4099_v15, %s3426_s20  ;;  %1885 = vrot.lane.b32.xlu0 %v4102_v42, %s3426_s20  ;;  %v3274_v39 = vpop.eup %3273  ;;  %v1644_v62 = vmul.f32 0.6931472, %v3272_v5  ;;  %v2594_v61 = vsel %vm340_vm8, 1.0, %v3431_v60  ;;  %3291 = vlog2.f32 %v4124_v18 }
 0x42c   :  { %v3276_v40 = vpop.eup %3275  ;;  %v1628_v12 = vsub.f32 %v1622_v23, %v1626_v24  ;;  %v1666_v31 = vmul.f32 0.6931472, %v3274_v39  ;;  %3293 = vlog2.f32 %v3815_v45 }
 0x42d   :  { %v3278_v28 = vpop.eup %3277  ;;  %v1650_v30 = vsub.f32 %v1644_v62, %v1648_v27  ;;  %v1670_v2 = vmul.f32 0.6931472, %v3276_v40 }
 0x42e   :  { %v1630_v29 = vmul.f32 %v1628_v12, %v1602_v46  ;;  %v1646_v49 = vmul.f32 0.6931472, %v3278_v28  ;;  %v544_v46 = vmul.f32 %v2594_v61, %v284_v19 }
 0x42f   :  { %v3280_v32 = vpop.eup %3279  ;;  %v1652_v4 = vmul.f32 %v1650_v30, %v1604_v47  ;;  %v1672_v3 = vsub.f32 %v1666_v31, %v1670_v2 }
 0x430   :  { %v3282_v33 = vpop.eup %3281  ;;  %1635 = vrot.lane.b32.xlu1 %v1630_v29, %s3425_s19  ;;  %v1620_v54 = vmul.f32 0.6931472, %v3280_v32 }
 0x431   :  { %v3284_v1 = vpop.eup %3283  ;;  %v1642_v55 = vmul.f32 0.6931472, %v3282_v33  ;;  %v1674_v34 = vmul.f32 %v1672_v3, %v1606_v63 }
 0x432   :  { %v1627_v10 = vsub.f32 %v1620_v54, %v1624_v25  ;;  %v3286_v41 = vpop.eup %3285  ;;  %v1664_v26 = vmul.f32 0.6931472, %v3284_v1 }
 0x433   :  { %v1649_v9 = vsub.f32 %v1642_v55, %v1646_v49  ;;  %v1668_v35 = vmul.f32 0.6931472, %v3286_v41  ;;  %v3288_v41 = vpop.eup %3287 }
 0x434   :  { %v1629_v8 = vmul.f32 %v1627_v10, %v1601_v14  ;;  %1657 = vrot.lane.b32.xlu1 %v1652_v4, %s3426_s20 }
 0x435   :  { %v1651_v36 = vmul.f32 %v1649_v9, %v1603_v17  ;;  %v1671_v37 = vsub.f32 %v1664_v26, %v1668_v35  ;;  %v2587_v17 = vsel %vm287_vm12, 1.0, %v3431_v60  ;;  %v3432_v9 = vmov 0   ;;  %v3290_v35 = vpop.eup %3289 }
 0x436   :  { %1633 = vrot.lane.b32.xlu0 %v1629_v8, %s3425_s19  ;;  %v3310_v53 = vadd.low.f32.bf16 %v2587_v17, %v3128_v48  ;;  %3182 = vset.pattern.permute.xlu1 %v3432_v9 }
 0x437   :  { %v1673_v38 = vmul.f32 %v1671_v37, %v1605_v22  ;;  %v3292_v37 = vpop.eup %3291 }
 0x438   :  { %1679 = vrot.lane.b32.xlu1 %v1674_v34, %s3427_s21  ;;  %v3311_v21 = vadd.low.f32.bf16 %v3310_v53, %v3133_v50  ;;  %v1608_v50 = vmul.f32 0.6931472, %v3292_v37 }
 0x43a   :  { %1655 = vrot.lane.b32.xlu0 %v1651_v36, %s3426_s20  ;;  %vm339_vm9 = vcmp.lt.f32.partialorder %v3311_v21, 2.0  ;;  %v1610_v36 = vmul.f32 0.6931472, %v3288_v41 }
 0x43b   :  { %v2593_v58 = vsel %vm339_vm9, 1.0, %v3431_v60 }
 0x43c   :  { %v543_v30 = vmul.f32 %v2593_v58, %v282_v43  ;;  %v3294_v43 = vpop.eup %3293 }
 0x43d   :  { %v1612_v56 = vmul.f32 0.6931472, %v3294_v43 }
 0x43e   :  { %1677 = vrot.lane.b32.xlu0 %v1673_v38, %s3427_s21  ;;  %v1614_v38 = vmul.f32 0.6931472, %v3290_v35 }
 0x440   :  { %v1616_v48 = vsub.f32 %v1610_v36, %v1614_v38 }
 0x442   :  { %v1618_v52 = vmul.f32 %v1616_v48, %v4117_v6 }
 0x479   :  { %v552_v59 = vpop.permute.xlu1 %551  ;;  %v550_v11 = vpop.permute.xlu0 %549 }
 0x47a   :  { %v556_v13 = vadd.f32 %v552_v59, %v544_v46  ;;  %v555_v33 = vadd.f32 %v550_v11, %v543_v30  ;;  %v1615_v59 = vsub.f32 %v1608_v50, %v1612_v56  ;;  %v3433_v46 = vmov 1  }
 0x47b   :  { %3176 = vset.pattern.permute.xlu0 %v3433_v46 }
 0x481   :  { %v564_v47 = vpop.permute.xlu1 %563  ;;  %v562_v63 = vpop.permute.xlu0 %561 }
 0x482   :  { %v568_v14 = vadd.f32 %v564_v47, %v556_v13  ;;  %v567_v55 = vadd.f32 %v562_v63, %v555_v33  ;;  %v1617_v63 = vmul.f32 %v1615_v59, %v4124_v18 }
 0x489   :  { %v576_v51 = vpop.permute.xlu1 %575  ;;  %v574_v22 = vpop.permute.xlu0 %573 }
 0x48a   :  { %v580_v20 = vadd.f32 %v576_v51, %v568_v14  ;;  %v579_v44 = vadd.f32 %v574_v22, %v567_v55 }
 0x48c   :  { %585 = vrot.lane.b32.xlu1 %v580_v20, %s3425_s19 }
 0x48d   :  { %v1786_v57 = vpop.permute.xlu1 %1785  ;;  %v1784_v5 = vpop.permute.xlu0 %1783 }
 0x48e   :  { %vm1790_vm10 = vcmp.gt.f32.partialorder %v4099_v15, %v1786_v57  ;;  %vm1789_vm13 = vcmp.gt.f32.partialorder %v4102_v42, %v1784_v5 }
 0x48f   :  { %v4160_v12 = vsel %vm1790_vm10, 1.0, %v3431_v60  ;;  %v4163_v27 = vsel %vm1789_vm13, 1.0, %v3431_v60 }
 0x490   :  { %v3141_v54 = vpack.i.bf16 %v4160_v12, %v4163_v27 }
 0x491   :  { %v1800_v23 = vpop.permute.xlu1 %1799  ;;  %v1798_v24 = vpop.permute.xlu0 %1797 }
 0x492   :  { %vm1804_vm14 = vcmp.gt.f32.partialorder %v4099_v15, %v1800_v23  ;;  %vm1803_vm5 = vcmp.gt.f32.partialorder %v4102_v42, %v1798_v24 }
 0x493   :  { %v2678_v39 = vsel %vm1804_vm14, 1.0, %v3431_v60  ;;  %v2677_v62 = vsel %vm1803_vm5, 1.0, %v3431_v60 }
 0x494   :  { %v3136_v40 = vpack.i.bf16 %v2678_v39, %v2677_v62 }
 0x495   :  { %v1822_v28 = vpop.permute.xlu1 %1821  ;;  %v1820_v29 = vpop.permute.xlu0 %1819 }
 0x496   :  { %vm1826_vm11 = vcmp.gt.f32.partialorder %v4099_v15, %v1822_v28  ;;  %vm1825_vm15 = vcmp.gt.f32.partialorder %v4102_v42, %v1820_v29  ;;  %3137 = vrot.lane.b32.xlu1 %v3136_v40, %s3425_s19 }
 0x497   :  { %v2680_v31 = vsel %vm1826_vm11, 1.0, %v3431_v60  ;;  %v2679_v32 = vsel %vm1825_vm15, 1.0, %v3431_v60 }
 0x498   :  { %v3146_v25 = vpack.i.bf16 %v2680_v31, %v2679_v32 }
 0x499   :  { %v1850_v2 = vpop.permute.xlu1 %1849  ;;  %v1848_v1 = vpop.permute.xlu0 %1847 }
 0x49a   :  { %vm1854_vm2 = vcmp.gt.f32.partialorder %v4099_v15, %v1850_v2  ;;  %vm1853_vm3 = vcmp.gt.f32.partialorder %v4102_v42, %v1848_v1  ;;  %3142 = vrot.lane.b32.xlu1 %v3141_v54, %s3426_s20  ;;  %3147 = vrot.lane.b32.xlu0 %v3146_v25, %s3426_s20 }
 0x49b   :  { %v4181_v10 = vsel %vm1854_vm2, 1.0, %v3431_v60  ;;  %v4184_v4 = vsel %vm1853_vm3, 1.0, %v3431_v60 }
 0x49c   :  { %v3156_v26 = vpack.i.bf16 %v4181_v10, %v4184_v4 }
 0x49d   :  { %v1888_v49 = vpop.permute.xlu1 %1887  ;;  %v1886_v3 = vpop.permute.xlu0 %1885 }
 0x49e   :  { %vm1892_vm4 = vcmp.gt.f32.partialorder %v4099_v15, %v1888_v49  ;;  %vm1891_vm7 = vcmp.gt.f32.partialorder %v4102_v42, %v1886_v3  ;;  %3152 = vrot.lane.b32.xlu1 %v3136_v40, %s3427_s21  ;;  %583 = vrot.lane.b32.xlu0 %v579_v44, %s3425_s19 }
 0x49f   :  { %v4191_v45 = vsel %vm1892_vm4, 1.0, %v3431_v60  ;;  %v4194_v8 = vsel %vm1891_vm7, 1.0, %v3431_v60 }
 0x4a0   :  { %v3166_v34 = vpack.i.bf16 %v4191_v45, %v4194_v8 }
 0x4a2   :  { %3162 = vrot.lane.b32.xlu1 %v3141_v54, %s3427_s21  ;;  %3157 = vrot.lane.b32.xlu0 %v3156_v26, %s3425_s19  ;;  %v1636_v19 = vpop.permute.xlu1 %1635 }
 0x4a3   :  { %v1640_v11 = vadd.f32 %v1636_v19, %v1618_v52 }
 0x4a6   :  { %1923 = vrot.lane.b32.xlu0 %v4102_v42, %s3427_s21  ;;  %v1658_v0 = vpop.permute.xlu1 %1657 }
 0x4a7   :  { %v1662_v13 = vadd.f32 %v1658_v0, %v1640_v11 }
 0x4a8   :  { %v1634_v61 = vpop.permute.xlu0 %1633 }
 0x4a9   :  { %v1639_v17 = vadd.f32 %v1634_v61, %v1617_v63 }
 0x4aa   :  { %1925 = vrot.lane.b32.xlu0 %v4099_v15, %s3427_s21  ;;  %v1680_v47 = vpop.permute.xlu1 %1679 }
 0x4ab   :  { %v1684_v51 = vadd.f32 %v1680_v47, %v1662_v13 }
 0x4ac   :  { %v1656_v14 = vpop.permute.xlu0 %1655 }
 0x4ad   :  { %v1661_v22 = vadd.f32 %v1656_v14, %v1639_v17  ;;  %v1686_v6 = vsel %vm589_vm6, %v1684_v51, 0.0 }
 0x4b0   :  { %v1678_v53 = vpop.permute.xlu0 %1677 }
 0x4b1   :  { %v1683_v20 = vadd.f32 %v1678_v53, %v1661_v22 }
 0x4b3   :  { %v1685_v21 = vsel %vm589_vm6, %v1683_v20, 0.0 }
 0x4b4   :  { %v1687_v57 = vadd.f32 %v1686_v6, %v1685_v21 }
 0x4c6   :  { %1688 = vadd.xlane.f32.xlu1 %v1687_v57 }
 0x4d7   :  { %3172 = vrot.lane.b32.xlu1 %v3156_v26, %s3426_s20 }
 0x4e8   :  { %v4212_v5 = vpop.f32.mrb[16].mxu1 }
 0x4e9   :  { %v4214_v23 = vpop.f32.mrb[17].mxu1 }
 0x4ec   :  { %v4216_v18 = vpop.f32.mrb[12].mxu0 }
 0x4ed   :  { %v4218_v24 = vpop.f32.mrb[13].mxu0 }
 0x4f0   :  { %v4220_v58 = vpop.f32.mrb[18].mxu1 }
 0x4f1   :  { %v4222_v39 = vpop.f32.mrb[19].mxu1 }
 0x4fe   :  { %v586_v62 = vpop.permute.xlu1 %585 }
 0x4ff   :  { %v591_v54 = vsel %vm589_vm6, %v586_v62, 0.0 }
 0x508   :  { %v3138_v40 = vpop.permute.xlu1 %3137 }
 0x509   :  { %v3320_v19 = vadd.high.f32.bf16 %v4160_v12, %v3138_v40  ;;  %v3321_v48 = vadd.low.f32.bf16 %v4163_v27, %v3138_v40 }
 0x50c   :  { %v3143_v28 = vpop.permute.xlu1 %3142  ;;  %v3148_v29 = vpop.permute.xlu0 %3147 }
 0x50d   :  { %v3312_v32 = vadd.high.f32.bf16 %v4181_v10, %v3143_v28  ;;  %v3313_v33 = vadd.low.f32.bf16 %v4184_v4, %v3143_v28  ;;  %v3322_v50 = vadd.high.f32.bf16 %v3320_v19, %v3148_v29  ;;  %v3323_v56 = vadd.low.f32.bf16 %v3321_v48, %v3148_v29 }
 0x50f   :  { %vm1842_vm10 = vcmp.lt.f32.partialorder %v3322_v50, 2.0  ;;  %vm1841_vm13 = vcmp.lt.f32.partialorder %v3323_v56, 2.0 }
 0x510   :  { %v3153_v30 = vpop.permute.xlu1 %3152  ;;  %v584_v31 = vpop.permute.xlu0 %583  ;;  %v2682_v0 = vsel %vm1842_vm10, 1.0, %v3431_v60  ;;  %v2681_v52 = vsel %vm1841_vm13, 1.0, %v3431_v60 }
 0x511   :  { %v590_v25 = vsel %vm589_vm6, %v584_v31, 0.0  ;;  %v3314_v2 = vadd.low.f32.bf16 %v3313_v33, %v3153_v30  ;;  %v3315_v1 = vadd.high.f32.bf16 %v3312_v32, %v3153_v30  ;;  %v3177_v59 = vpack.i.bf16 %v2682_v0, %v2681_v52 }
 0x512   :  { %v592_v55 = vadd.f32 %v591_v54, %v590_v25 }
 0x513   :  { %vm1879_vm1 = vcmp.lt.f32.partialorder %v3314_v2, 2.0  ;;  %vm1880_vm8 = vcmp.lt.f32.partialorder %v3315_v1, 2.0 }
 0x514   :  { %v3158_v44 = vpop.permute.xlu0 %3157  ;;  %v3163_v49 = vpop.permute.xlu1 %3162  ;;  %593 = vadd.xlane.f32.xlu0 %v592_v55  ;;  %v2685_v3 = vsel %vm1879_vm1, 1.0, %v3431_v60  ;;  %v2686_v41 = vsel %vm1880_vm8, 1.0, %v3431_v60 }
 0x515   :  { %v3183_v26 = vpack.i.bf16 %v2686_v41, %v2685_v3  ;;  %v3316_v10 = vadd.high.f32.bf16 %v4191_v45, %v3158_v44  ;;  %v3317_v4 = vadd.low.f32.bf16 %v4194_v8, %v3158_v44 }
 0x517   :  { %3184 = vperm.xlu1 %3182, %v3183_v26   ;;  %v3318_v35 = vadd.high.f32.bf16 %v3316_v10, %v3163_v49  ;;  %v3319_v36 = vadd.low.f32.bf16 %v3317_v4, %v3163_v49 }
 0x518   :  { %v1924_v61 = vpop.permute.xlu0 %1923 }
 0x519   :  { %vm1918_vm12 = vcmp.lt.f32.partialorder %v3318_v35, 2.0  ;;  %vm1917_vm9 = vcmp.lt.f32.partialorder %v3319_v36, 2.0  ;;  %vm1929_vm14 = vcmp.gt.f32.partialorder %v4102_v42, %v1924_v61 }
 0x51a   :  { %v2690_v37 = vsel %vm1918_vm12, 1.0, %v3431_v60  ;;  %v2689_v38 = vsel %vm1917_vm9, 1.0, %v3431_v60 }
 0x51b   :  { %v3188_v43 = vpack.i.bf16 %v2690_v37, %v2689_v38 }
 0x51c   :  { %v1926_v11 = vpop.permute.xlu0 %1925 }
 0x51d   :  { %3189 = vperm.xlu1 %3182, %v3188_v43   ;;  %vm1930_vm5 = vcmp.gt.f32.partialorder %v4099_v15, %v1926_v11 }
 0x51e   :  { %v2692_v22 = vsel %vm1930_vm5, 1.0, %v3431_v60 }
 0x52a   :  { %3167 = vrot.lane.b32.xlu0 %v3166_v34, %s3425_s19  ;;  %s2542_s19 = sshll.u32 %s3434_s3, 4  ;;  %s2543_s19 = int_to_ptr.vmem [resolvable:$true] %s2542_s19 }
 0x52b   :  { %s3328_s20 = scalar_lea.vmem %s2543_s19, 256  ;;  %p3333_p1 = scmp.lt.s32.totalorder %s2543_s19, %s2543_s19 }
 0x52c   :  { %p3329_p0 = scmp.ne.s32.totalorder %s2543_s19, %s3328_s20  ;;  %p3334_p2 = scmp.lt.s32.totalorder %s3328_s20, %s3328_s20 }
 0x52e   :  { %3178 = vperm.xlu0 %3176, %v3177_v59   ;;  %p3335_p3 = por %p3334_p2, %p3333_p1 }
 0x530   :  { %p3336_p4 = pnand %p3335_p3, %p3329_p0 }
 0x532   :  { %3193 = vset.pattern.permute.xlu0 %v3432_v9  ;;  %v2691_v9 = vsel %vm1929_vm14, 1.0, %v3431_v60 }
 0x553   :  { %v1689_v12 = vpop.xlane.xlu1 %1688 }
 0x554   :  { %v1690_v27 = vrot.slane %v1689_v12, 4 }
 0x556   :  { %v1691_v46 = vadd.f32 %v1690_v27, %v1689_v12 }
 0x557   :  { %v3173_v13 = vpop.permute.xlu1 %3172 }
 0x558   :  { %v1692_v47 = vrot.slane %v1691_v46, 2 }
 0x55a   :  { %v1693_v8 = vadd.f32 %v1692_v47, %v1691_v46 }
 0x55c   :  { %v1694_v21 = vrot.slane %v1693_v8, 1 }
 0x55e   :  { %v1695_v54 = vadd.f32 %v1694_v21, %v1693_v8 }
 0x596   :  { %v3185_v34 = vpop.permute.xlu1 %3184 }
 0x597   :  { %v3187_v42 = vunpack.i.h.bf16 %v3185_v34  ;;  %v3186_v29 = vunpack.i.l.bf16 %v3185_v34 }
 0x599   :  { %v2320_v44 = vmul.f32 %v3187_v42, %v4212_v5  ;;  %v2319_v49 = vmul.f32 %v3186_v29, %v4214_v23 }
 0x59c   :  { %v3190_v57 = vpop.permute.xlu1 %3189 }
 0x59d   :  { %v3192_v30 = vunpack.i.h.bf16 %v3190_v57  ;;  %v3191_v25 = vunpack.i.l.bf16 %v3190_v57 }
 0x59f   :  { %v2419_v26 = vmul.f32 %v3192_v30, %v4216_v18 }
 0x5a1   :  { %v594_v63 = vpop.xlane.xlu0 %593 }
 0x5a2   :  { %v595_v14 = vrot.slane %v594_v63, 4 }
 0x5a4   :  { %v596_v17 = vadd.f32 %v595_v14, %v594_v63 }
 0x5a5   :  { %v3168_v45 = vpop.permute.xlu0 %3167 }
 0x5a6   :  { %v597_v51 = vrot.slane %v596_v17, 2  ;;  %v3324_v53 = vadd.high.f32.bf16 %v2692_v22, %v3168_v45  ;;  %v3325_v6 = vadd.low.f32.bf16 %v2691_v9, %v3168_v45 }
 0x5a8   :  { %v598_v20 = vadd.f32 %v597_v51, %v596_v17  ;;  %v3326_v62 = vadd.high.f32.bf16 %v3324_v53, %v3173_v13  ;;  %v3327_v40 = vadd.low.f32.bf16 %v3325_v6, %v3173_v13 }
 0x5aa   :  { %v599_v28 = vrot.slane %v598_v20, 1  ;;  %vm1956_vm11 = vcmp.lt.f32.partialorder %v3326_v62, 2.0  ;;  %vm1955_vm15 = vcmp.lt.f32.partialorder %v3327_v40, 2.0 }
 0x5ab   :  { %v2694_v31 = vsel %vm1956_vm11, 1.0, %v3431_v60  ;;  %v2693_v32 = vsel %vm1955_vm15, 1.0, %v3431_v60  ;;  %v2418_v60 = vmul.f32 %v3191_v25, %v4218_v24 }
 0x5ac   :  { %v600_v15 = vadd.f32 %v599_v28, %v598_v20  ;;  %v3194_v55 = vpack.i.bf16 %v2694_v31, %v2693_v32 }
 0x5ad   :  { %v3179_v33 = vpop.permute.xlu0 %3178 }
 0x5ae   :  { %v3181_v2 = vunpack.i.h.bf16 %v3179_v33  ;;  %v3180_v1 = vunpack.i.l.bf16 %v3179_v33  ;;  %3074 = vpush %v600_v15  ;;  %3195 = vperm.xlu0 %3193, %v3194_v55  }
 0x5af   :  { %3076 = vpush %v1695_v54 }
 0x5b0   :  { %v2221_v3 = vmul.f32 %v3181_v2, %v4138_v16  ;;  %v2220_v41 = vmul.f32 %v3180_v1, %v4140_v7 }
 0x5b2   :  { %v2322_v10 = vadd.f32 %v2320_v44, %v2221_v3  ;;  %v2321_v4 = vadd.f32 %v2319_v49, %v2220_v41 }
 0x5b4   :  { %v4255_v35 = vadd.f32 %v2418_v60, %v2321_v4  ;;  %v4257_v36 = vadd.f32 %v2419_v26, %v2322_v10 }
 0x5b5   :  { %3339 = shalt.err (!%p3336_p4)
}
 0x5b6   :  { %s3340_s14 = scalar_lea.hbm %s4340_s11, 256 }
 0x5b7   :  { %p3341_p5 = scmp.ne.s32.totalorder %s4340_s11, %s3340_s14  ;;  %p3344_p6 = scmp.lt.u32.totalorder %s3340_s14, %s4340_s11 }
 0x5b9   :  { %p3346_p7 = pnand %p3344_p6, %p3341_p5 }
 0x5bb   :  { %3349 = shalt.err (!%p3346_p7)
}
 0x5bc   :  { %s3435_s22 = smov 128   ;;  %s3436_s4 = smov 8   ;;  %vm607_vm2 = vcmask 0  }
 0x5bd   :  { %2548 = dma.vmem_to_hbm [thread:$0]  %s2543_s19, 256, %s4340_s11, [#allocation5], %s3435_s22, %s3435_s22, %s3436_s4  }
 0x5be   :  { %s3437_s1 = smov [#allocation6]   ;;  %s3438_s25 = smov [#allocation7]  }
 0x5bf   :  { %s2555_s18 = sshll.u32 %s3437_s1, 4  ;;  %s2565_s26 = sshll.u32 %s3438_s25, 4  ;;  %s2556_s18 = int_to_ptr.vmem [resolvable:$true] %s2555_s18  ;;  %s4274_s26 = int_to_ptr.vmem [resolvable:$true] %s2565_s26 }
 0x5c0   :  { %s3350_s27 = scalar_lea.vmem %s2556_s18, 16  ;;  %s3354_s11 = scalar_lea.vmem %s2556_s18, 32 }
 0x5c1   :  { %p3351_p8 = scmp.ne.s32.totalorder %s2556_s18, %s3350_s27  ;;  %p3355_p9 = scmp.lt.s32.totalorder %s2556_s18, %s2556_s18 }
 0x5c2   :  { %p3356_p10 = scmp.lt.s32.totalorder %s3354_s11, %s3350_s27 }
 0x5c4   :  { %p3357_p11 = por %p3356_p10, %p3355_p9 }
 0x5c6   :  { %p3358_p12 = pnand %p3357_p11, %p3351_p8 }
 0x5df   :  { %s3075_s16 = spop %3074 }
 0x5e0   :  { %v602_v16 = vstv %s3075_s16  ;;  %s3077_s24 = spop %3076 }
 0x5e1   :  { %v604_v7 = vmul.f32 0.0625, %v602_v16  ;;  %v1697_v5 = vstv %s3077_s24 }
 0x5e2   :  { %v1698_v23 = vmul.f32 0.0625, %v1697_v5 }
 0x5e3   :  { %v606_v18 = vmul.f32 0.25, %v604_v7 }
 0x5e4   :  { %1699 = vst.msk [vmem:[#allocation6] sm:$0x1] %vm607_vm2, %v1698_v23 }
 0x5e5   :  { %3361 = shalt.err (!%p3358_p12)
}
 0x5e6   :  { %s3362_s2 = scalar_lea.hbm %s4341_s12, 16 }
 0x5e7   :  { %p3363_p13 = scmp.ne.s32.totalorder %s4341_s12, %s3362_s2  ;;  %p3366_p0 = scmp.lt.u32.totalorder %s3362_s2, %s4341_s12 }
 0x5e9   :  { %p3368_p1 = pnand %p3366_p0, %p3363_p13 }
 0x5eb   :  { %3371 = shalt.err (!%p3368_p1)
}
 0x5ec   :  { %2558 = dma.vmem_to_hbm [thread:$0]  %s2556_s18, 16, %s4341_s12, [#allocation5]   ;;  %608 = vst.msk [vmem:[#allocation7] sm:$0x1] %vm607_vm2, %v606_v18 }
 0x5ed   :  { %s3372_s21 = scalar_lea.vmem %s4274_s26, 16  ;;  %s3376_s8 = scalar_lea.vmem %s4274_s26, 32 }
 0x5ee   :  { %p3373_p2 = scmp.ne.s32.totalorder %s4274_s26, %s3372_s21  ;;  %p3377_p3 = scmp.lt.s32.totalorder %s4274_s26, %s4274_s26 }
 0x5ef   :  { %p3378_p4 = scmp.lt.s32.totalorder %s3376_s8, %s3372_s21 }
 0x5f1   :  { %p3379_p5 = por %p3378_p4, %p3377_p3 }
 0x5f3   :  { %p3380_p6 = pnand %p3379_p5, %p3373_p2 }
 0x5f5   :  { %3383 = shalt.err (!%p3380_p6)
}
 0x5f6   :  { %s3384_s5 = scalar_lea.hbm %s4342_s13, 16 }
 0x5f7   :  { %p3385_p7 = scmp.ne.s32.totalorder %s4342_s13, %s3384_s5  ;;  %p3388_p8 = scmp.lt.u32.totalorder %s3384_s5, %s4342_s13 }
 0x5f9   :  { %p3390_p9 = pnand %p3388_p8, %p3385_p7 }
 0x5fb   :  { %3393 = shalt.err (!%p3390_p9)
}
 0x5fc   :  { %2568 = dma.vmem_to_hbm [thread:$0]  %s4274_s26, 16, %s4342_s13, [#allocation8]  }
 0x5fd   :  { %s3439_s1 = smov [#allocation2]  }
 0x5fe   :  { %s2530_s18 = sshll.u32 %s3439_s1, 4  ;;  %s2531_s18 = int_to_ptr.vmem [resolvable:$true] %s2530_s18 }
 0x5ff   :  { %s3394_s13 = scalar_lea.vmem %s2531_s18, 256  ;;  %p3399_p11 = scmp.lt.s32.totalorder %s2531_s18, %s2531_s18 }
 0x600   :  { %p3395_p10 = scmp.ne.s32.totalorder %s2531_s18, %s3394_s13  ;;  %p3400_p12 = scmp.lt.s32.totalorder %s3394_s13, %s3394_s13 }
 0x602   :  { %p3401_p13 = por %p3400_p12, %p3399_p11 }
 0x604   :  { %p3402_p0 = pnand %p3401_p13, %p3395_p10 }
 0x62d   :  { %v3196_v24 = vpop.permute.xlu0 %3195 }
 0x62e   :  { %v3198_v37 = vunpack.i.h.bf16 %v3196_v24  ;;  %v3197_v38 = vunpack.i.l.bf16 %v3196_v24 }
 0x630   :  { %v2518_v43 = vmul.f32 %v3198_v37, %v4220_v58  ;;  %v2517_v19 = vmul.f32 %v3197_v38, %v4222_v39 }
 0x632   :  { %v2519_v48 = vadd.f32 %v2517_v19, %v4255_v35  ;;  %v2520_v50 = vadd.f32 %v2518_v43, %v4257_v36 }
 0x634   :  { %v2521_v56 = vmul.f32 2.0, %v2519_v48  ;;  %v2522_v0 = vmul.f32 2.0, %v2520_v50 }
 0x636   :  { %2523 = vst.msk [vmem:[#allocation2] sm:$0xff] %vm65_vm0, %v2521_v56  ;;  %2524 = vst.msk [vmem:[#allocation2 + $0x8] sm:$0xff] %vm65_vm0, %v2522_v0 }
 0x637   :  { %3405 = shalt.err (!%p3402_p0)
}
 0x638   :  { %s3406_s26 = scalar_lea.hbm %s4339_s10, 256 }
 0x639   :  { %p3407_p1 = scmp.ne.s32.totalorder %s4339_s10, %s3406_s26  ;;  %p3410_p2 = scmp.lt.u32.totalorder %s3406_s26, %s4339_s10 }
 0x63b   :  { %p3412_p3 = pnand %p3410_p2, %p3407_p1 }
 0x63d   :  { %3415 = shalt.err (!%p3412_p3)
}
 0x63e   :  { %2536 = dma.vmem_to_hbm [thread:$0]  %s2531_s18, 256, %s4339_s10, [#allocation3], %s3435_s22, %s3435_s22, %s3436_s4  }
 0x63f   :  { %3416 = dma.done.wait [#allocation3], 256  }
 0x640   :  { %3417 = vsyncadd [#allocation3], 4294967040 }
 0x641   :  { %3418 = dma.done.wait [#allocation5], 272  }
 0x642   :  { %3419 = vsyncadd [#allocation5], 4294967024 }
 0x643   :  { %3420 = dma.done.wait [#allocation8], 16  }
 0x644   :  { %3421 = vsyncadd [#allocation8], 4294967280 }
 0x645   :  { %2581 = vsyncpa [#allocation3], 1 }
 0x646   :  { %2582 = vsyncpa [#allocation5], 1 }
 0x647   :  { %2583 = vsyncpa [#allocation8], 1 }

</bundles_post_ra>
